<compile_context>
chip_gen: v6e
topology: v6e:2x2x1
jax: 0.10.0
libtpu: 0.0.40
codegen_flags: <defaults>
</compile_context>

<pallas_src>
import numpy as np
import jax
import jax.numpy as jnp
from jax import lax
from jax.experimental import pallas as pl
from jax.experimental.pallas import tpu as pltpu

D = 512          # input_dim
H = 256          # hidden_dim
SUPER_CLASSES = {
    "queen_like":   ["Queen", "Business", "Fire", "Inferno"],
    "fragile_like": ["Fragile", "Warm", "Vintage"],
    "strong_like":  ["Strong", "Aristocratic", "Renaissance"],
    "soft_like":    ["Soft", "Sunny"],
    "serious_like": ["Serious", "Heroin", "Melting"],
}
GROUP_SIZES = [len(v) for v in SUPER_CLASSES.values()]   # [4, 3, 3, 2, 3]
GROUP_STARTS = list(np.cumsum([0] + GROUP_SIZES[:-1]))   # [0, 4, 7, 10, 12]
NUM_CLASSES = sum(GROUP_SIZES)                           # 15
NUM_SUPER = len(SUPER_CLASSES)                           # 5
NUM_HEADS = 1 + NUM_SUPER                                # super + 5 sub heads
PACK = 128          # lane-dense packed second-layer output width (one vreg)
BN_EPS = 1e-5
TB_DEFAULT = 1024   # batch tile (rows per grid step) for large batches


def hier_kernel(x_ref, w1_ref, b1_ref, w2_ref, b2_ref, out_ref):
    x = x_ref[...].astype(jnp.bfloat16)                               # (TB, D)
    # Fused first layers of all 6 heads (BN already folded into w1/b1).
    h = jnp.dot(x, w1_ref[...], preferred_element_type=jnp.float32)   # (TB, 6H)
    h = jnp.maximum(h + b1_ref[...], 0.0)          # bias + ReLU (Dropout = id)
    # Fused (block-diagonal) second layers: (TB, 6H) @ (6H, 128)
    logits = jnp.dot(h.astype(jnp.bfloat16), w2_ref[...],
                     preferred_element_type=jnp.float32) + b2_ref[...]  # (TB,128)
    # softmax over the 5 super logits (lanes [15:20)), f32 epilogue
    sup = logits[:, NUM_CLASSES:NUM_CLASSES + NUM_SUPER]               # (TB, 5)
    m = jnp.max(sup, axis=-1, keepdims=True)
    ex = jnp.exp(sup - m)
    inv = pl.reciprocal(jnp.sum(ex, axis=-1, keepdims=True), approx=True)
    probs = ex * inv                                                   # (TB, 5)
    # Membership expansion on the VPU: gate lane j (class j) with the prob of
    # its super group.  Lane-range masks are built from a constant iota, so
    # this is 5 broadcast-multiply-adds instead of an f32 MXU matmul; lanes
    # [15:128) (super logits + padding) get gate 0 -> the full-width store
    # stays lane-dense and needs no masking.
    lane = lax.broadcasted_iota(jnp.int32, (1, PACK), 1)
    gate = None
    for i, (s0, n) in enumerate(zip(GROUP_STARTS, GROUP_SIZES)):
        mask = jnp.logical_and(lane >= s0, lane < s0 + n).astype(jnp.float32)
        term = probs[:, i:i + 1] * mask                                # (TB,128)
        gate = term if gate is None else gate + term
    out_ref[...] = logits * gate                                       # (TB,128)


def _pick_tile(B, tb_default=TB_DEFAULT):
    """Batch tile: multiple of 8, <= tb_default, and (for B > 8) small enough
    that the grid has >= 2 steps so both of v7x's TensorCores get work."""
    if B <= 8:
        return B                                   # single full-array block
    tb = min(tb_default, (B // 8) * 8)             # multiple of 8, <= B
    half = -(-B // 2)                              # cdiv(B, 2)
    half = ((half + 7) // 8) * 8                   # round up to multiple of 8
    return max(min(tb, half), 8)


def hierarchical_forward(x, w1, b1, w2, b2):
    """Returns the lane-dense (B, 128) f32 slab.

    Lanes [0:NUM_CLASSES) are exactly the module's final_logits (class_to_idx
    = dict-order concatenation); lanes [15:128) are zero.  Consumers should
    take the slab directly (or fuse their own slice) rather than paying an
    extra HBM pass to materialize a (B, 15) copy.
    """
    B = x.shape[0]
    tb = _pick_tile(B)
    x_map = lambda i: (i, 0)
    w_map = lambda i: (0, 0)          # weights resident across batch tiles

    bytes_accessed = (B * D * x.dtype.itemsize + B * PACK * 4
                      + w1.size * w1.dtype.itemsize + b1.size * 4
                      + w2.size * w2.dtype.itemsize + b2.size * 4)
    cost = pl.CostEstimate(
        flops=2 * B * (D * NUM_HEADS * H + NUM_HEADS * H * PACK),
        transcendentals=B * (NUM_SUPER + 1),       # exp x5 + reciprocal
        bytes_accessed=bytes_accessed,
    )

    return pl.pallas_call(
        hier_kernel,
        out_shape=jax.ShapeDtypeStruct((B, PACK), jnp.float32),
        grid=(pl.cdiv(B, tb),),
        in_specs=[
            pl.BlockSpec((tb, D), x_map),
            pl.BlockSpec((D, NUM_HEADS * H), w_map),
            pl.BlockSpec((1, NUM_HEADS * H), w_map),
            pl.BlockSpec((NUM_HEADS * H, PACK), w_map),
            pl.BlockSpec((1, PACK), w_map),
        ],
        out_specs=pl.BlockSpec((tb, PACK), x_map),
        compiler_params=pltpu.CompilerParams(
            dimension_semantics=("parallel",),
        ),
        cost_estimate=cost,
    )(x, w1, b1, w2, b2)


def init_params(key):
    """Deterministic synthetic parameters for all 6 heads."""
    head_names = ["super"] + list(SUPER_CLASSES.keys())
    out_dims = [NUM_SUPER] + GROUP_SIZES
    params = {}
    for name, n_out in zip(head_names, out_dims):
        key, k1, k2, k3, k4, k5, k6, k7 = jax.random.split(key, 8)
        params[name] = dict(
            w1=jax.random.normal(k1, (D, H), jnp.float32) * 0.05,
            b1=jax.random.normal(k2, (H,), jnp.float32) * 0.05,
            gamma=1.0 + 0.1 * jax.random.normal(k3, (H,), jnp.float32),
            beta=0.1 * jax.random.normal(k4, (H,), jnp.float32),
            mean=0.1 * jax.random.normal(k5, (H,), jnp.float32),
            var=0.5 + jnp.abs(jax.random.normal(k6, (H,), jnp.float32)),
            w2=jax.random.normal(k7, (H, n_out), jnp.float32) * 0.05,
            b2=jax.random.normal(key, (n_out,), jnp.float32) * 0.05,
        )
    return params


def pack_params(params):
    """Concatenate / block-diagonalize params for the fused kernel.

    Folds BatchNorm (eval mode) into the first Linear and casts the two big
    weight matrices to bfloat16 (biases stay f32).  Second-layer packing:
    sub logits -> lanes [0:15), super logits -> lanes [15:20).
    """
    head_names = ["super"] + list(SUPER_CLASSES.keys())
    w1_cols, b1_cols = [], []
    for n in head_names:
        p = params[n]
        s = p["gamma"] / jnp.sqrt(p["var"] + BN_EPS)          # (H,)
        w1_cols.append(p["w1"] * s[None, :])                  # fold BN scale
        b1_cols.append(p["b1"] * s + p["beta"] - p["mean"] * s)
    w1 = jnp.concatenate(w1_cols, axis=1)                     # (D, 6H)
    b1 = jnp.concatenate(b1_cols)[None, :]                    # (1, 6H)

    w2 = np.zeros((NUM_HEADS * H, PACK), np.float32)
    b2 = np.zeros((1, PACK), np.float32)
    # sub heads -> lanes [0:15), block-diagonal over hidden rows
    for i, name in enumerate(SUPER_CLASSES):
        n = GROUP_SIZES[i]
        r0 = (i + 1) * H
        c0 = GROUP_STARTS[i]
        w2[r0:r0 + H, c0:c0 + n] = np.asarray(params[name]["w2"])
        b2[0, c0:c0 + n] = np.asarray(params[name]["b2"])
    # super head -> lanes [15:20)
    w2[0:H, NUM_CLASSES:NUM_CLASSES + NUM_SUPER] = np.asarray(params["super"]["w2"])
    b2[0, NUM_CLASSES:NUM_CLASSES + NUM_SUPER] = np.asarray(params["super"]["b2"])
    return (w1.astype(jnp.bfloat16), b1,
            jnp.asarray(w2).astype(jnp.bfloat16), jnp.asarray(b2))


def reference_forward(x, params):
    """Pure-JAX f32 replica of the PyTorch forward (eval mode)."""
    def head(p):
        h = x @ p["w1"] + p["b1"]
        h = (h - p["mean"]) / jnp.sqrt(p["var"] + BN_EPS) * p["gamma"] + p["beta"]
        h = jnp.maximum(h, 0.0)
        return h @ p["w2"] + p["b2"]
    probs = jax.nn.softmax(head(params["super"]), axis=1)
    outs = []
    for i, name in enumerate(SUPER_CLASSES):
        outs.append(head(params[name]) * probs[:, i:i + 1])
    return jnp.concatenate(outs, axis=1)   # class_to_idx = concatenation order


if __name__ == "__main__":
    B = 8
    key = jax.random.PRNGKey(0)
    kx, kp = jax.random.split(key)
    x = jax.random.normal(kx, (B, D), jnp.float32)

    params = init_params(kp)
    packed = pack_params(params)
    ref = jax.block_until_ready(reference_forward(x, params))

    run = jax.jit(hierarchical_forward)

    # f32 input path (default): lanes [0:15) of the slab are the final logits.
    # The slice below is test-only; production consumers take the slab.
    slab = jax.block_until_ready(run(x, *packed))
    out = np.asarray(slab)[:, :NUM_CLASSES]
    np.testing.assert_allclose(out, np.asarray(ref), rtol=2e-2, atol=2e-2)
    np.testing.assert_allclose(np.asarray(slab)[:, NUM_CLASSES:], 0.0)
    assert slab.shape == (B, PACK) and slab.dtype == jnp.float32

    # bf16 input path (v6e/v7x HBM-traffic optimization): the kernel accepts
    # bf16 x directly, no wrapper-side cast pass.
    slab_bf16 = jax.block_until_ready(run(x.astype(jnp.bfloat16), *packed))
    out_bf16 = np.asarray(slab_bf16)[:, :NUM_CLASSES]
    np.testing.assert_allclose(out_bf16, np.asarray(ref), rtol=5e-2, atol=5e-2)

    print("KERNEL_OK")
</pallas_src>

<mosaic_0001>
module attributes {stable_mosaic.version = 11 : i64} {
  func.func @hier_kernel(%arg0: i32, %arg1: memref<8x512xf32, #tpu.memory_space<vmem>>, %arg2: memref<512x1536xbf16, #tpu.memory_space<vmem>>, %arg3: memref<1x1536xf32, #tpu.memory_space<vmem>>, %arg4: memref<1536x128xbf16, #tpu.memory_space<vmem>>, %arg5: memref<1x128xf32, #tpu.memory_space<vmem>>, %arg6: memref<8x128xf32, #tpu.memory_space<vmem>>) attributes {dimension_semantics = [#tpu.dimension_semantics<parallel>], iteration_bounds = array<i64: 1>, scalar_prefetch = 0 : i64, scratch_operands = 0 : i64, tpu.core_type = #tpu.core_type<tc>, window_params = [{transform_indices = @transform_0, window_bounds = array<i64: 8, 512>}, {pipeline_mode = #tpu.pipeline_mode<synchronous>, transform_indices = @transform_1, window_bounds = array<i64: 512, 1536>}, {pipeline_mode = #tpu.pipeline_mode<synchronous>, transform_indices = @transform_2, window_bounds = array<i64: 1, 1536>}, {pipeline_mode = #tpu.pipeline_mode<synchronous>, transform_indices = @transform_3, window_bounds = array<i64: 1536, 128>}, {pipeline_mode = #tpu.pipeline_mode<synchronous>, transform_indices = @transform_4, window_bounds = array<i64: 1, 128>}, {transform_indices = @transform_5, window_bounds = array<i64: 8, 128>}]} {
    %c0 = arith.constant 0 : index
    %c0_0 = arith.constant 0 : index
    %0 = vector.load %arg1[%c0, %c0_0] : memref<8x512xf32, #tpu.memory_space<vmem>>, vector<8x512xf32>
    %1 = arith.truncf %0 : vector<8x512xf32> to vector<8x512xbf16>
    %c0_1 = arith.constant 0 : index
    %c0_2 = arith.constant 0 : index
    %2 = vector.load %arg2[%c0_1, %c0_2] : memref<512x1536xbf16, #tpu.memory_space<vmem>>, vector<512x1536xbf16>
    %cst = arith.constant dense<0.000000e+00> : vector<8x1536xf32>
    %3 = tpu.matmul %1, %2, %cst {dimension_numbers = #tpu.dot_dimension_numbers<[1], [0], [0], [1], [0, 0, 1, 1], [], []>} : vector<8x512xbf16>, vector<512x1536xbf16>, vector<8x1536xf32> -> vector<8x1536xf32>
    %c0_3 = arith.constant 0 : index
    %c0_4 = arith.constant 0 : index
    %4 = vector.load %arg3[%c0_3, %c0_4] : memref<1x1536xf32, #tpu.memory_space<vmem>>, vector<1x1536xf32>
    %5 = vector.broadcast %4 : vector<1x1536xf32> to vector<8x1536xf32>
    %6 = arith.addf %3, %5 : vector<8x1536xf32>
    %cst_5 = arith.constant 0.000000e+00 : f32
    %7 = vector.broadcast %cst_5 : f32 to vector<8x1536xf32>
    %8 = arith.maximumf %6, %7 : vector<8x1536xf32>
    %9 = arith.truncf %8 : vector<8x1536xf32> to vector<8x1536xbf16>
    %c0_6 = arith.constant 0 : index
    %c0_7 = arith.constant 0 : index
    %10 = vector.load %arg4[%c0_6, %c0_7] : memref<1536x128xbf16, #tpu.memory_space<vmem>>, vector<1536x128xbf16>
    %cst_8 = arith.constant dense<0.000000e+00> : vector<8x128xf32>
    %11 = tpu.matmul %9, %10, %cst_8 {dimension_numbers = #tpu.dot_dimension_numbers<[1], [0], [0], [1], [0, 0, 1, 1], [], []>} : vector<8x1536xbf16>, vector<1536x128xbf16>, vector<8x128xf32> -> vector<8x128xf32>
    %c0_9 = arith.constant 0 : index
    %c0_10 = arith.constant 0 : index
    %12 = vector.load %arg5[%c0_9, %c0_10] : memref<1x128xf32, #tpu.memory_space<vmem>>, vector<1x128xf32>
    %13 = vector.broadcast %12 : vector<1x128xf32> to vector<8x128xf32>
    %14 = arith.addf %11, %13 : vector<8x128xf32>
    %15 = vector.extract_strided_slice %14 {offsets = [0, 15], sizes = [8, 5], strides = [1, 1]} : vector<8x128xf32> to vector<8x5xf32>
    %cst_11 = arith.constant dense<0xFF800000> : vector<8xf32>
    %16 = vector.multi_reduction <maximumf>, %15, %cst_11 [1] : vector<8x5xf32> to vector<8xf32>
    %17 = vector.shape_cast %16 : vector<8xf32> to vector<8x1xf32>
    %18 = vector.broadcast %17 : vector<8x1xf32> to vector<8x5xf32>
    %19 = arith.subf %15, %18 : vector<8x5xf32>
    %20 = math.exp %19 : vector<8x5xf32>
    %cst_12 = arith.constant dense<0.000000e+00> : vector<8xf32>
    %21 = vector.multi_reduction <add>, %20, %cst_12 [1] : vector<8x5xf32> to vector<8xf32>
    %22 = vector.shape_cast %21 : vector<8xf32> to vector<8x1xf32>
    %23 = tpu.reciprocal %22 {approx = true} : vector<8x1xf32> -> vector<8x1xf32>
    %24 = vector.broadcast %23 : vector<8x1xf32> to vector<8x5xf32>
    %25 = arith.mulf %20, %24 : vector<8x5xf32>
    %26 = tpu.iota {dimensions = array<i32: 1>} : vector<1x128xi32>
    %c0_i32 = arith.constant 0 : i32
    %27 = vector.broadcast %c0_i32 : i32 to vector<1x128xi32>
    %28 = arith.cmpi sge, %26, %27 : vector<1x128xi32>
    %c4_i32 = arith.constant 4 : i32
    %29 = vector.broadcast %c4_i32 : i32 to vector<1x128xi32>
    %30 = arith.cmpi slt, %26, %29 : vector<1x128xi32>
    %31 = arith.andi %28, %30 : vector<1x128xi1>
    %32 = arith.extui %31 : vector<1x128xi1> to vector<1x128xi32>
    %33 = arith.sitofp %32 : vector<1x128xi32> to vector<1x128xf32>
    %34 = vector.extract_strided_slice %25 {offsets = [0, 0], sizes = [8, 1], strides = [1, 1]} : vector<8x5xf32> to vector<8x1xf32>
    %35 = vector.broadcast %34 : vector<8x1xf32> to vector<8x128xf32>
    %36 = vector.broadcast %33 : vector<1x128xf32> to vector<8x128xf32>
    %37 = arith.mulf %35, %36 : vector<8x128xf32>
    %c4_i32_13 = arith.constant 4 : i32
    %38 = vector.broadcast %c4_i32_13 : i32 to vector<1x128xi32>
    %39 = arith.cmpi sge, %26, %38 : vector<1x128xi32>
    %c7_i32 = arith.constant 7 : i32
    %40 = vector.broadcast %c7_i32 : i32 to vector<1x128xi32>
    %41 = arith.cmpi slt, %26, %40 : vector<1x128xi32>
    %42 = arith.andi %39, %41 : vector<1x128xi1>
    %43 = arith.extui %42 : vector<1x128xi1> to vector<1x128xi32>
    %44 = arith.sitofp %43 : vector<1x128xi32> to vector<1x128xf32>
    %45 = vector.extract_strided_slice %25 {offsets = [0, 1], sizes = [8, 1], strides = [1, 1]} : vector<8x5xf32> to vector<8x1xf32>
    %46 = vector.broadcast %45 : vector<8x1xf32> to vector<8x128xf32>
    %47 = vector.broadcast %44 : vector<1x128xf32> to vector<8x128xf32>
    %48 = arith.mulf %46, %47 : vector<8x128xf32>
    %49 = arith.addf %37, %48 : vector<8x128xf32>
    %c7_i32_14 = arith.constant 7 : i32
    %50 = vector.broadcast %c7_i32_14 : i32 to vector<1x128xi32>
    %51 = arith.cmpi sge, %26, %50 : vector<1x128xi32>
    %c10_i32 = arith.constant 10 : i32
    %52 = vector.broadcast %c10_i32 : i32 to vector<1x128xi32>
    %53 = arith.cmpi slt, %26, %52 : vector<1x128xi32>
    %54 = arith.andi %51, %53 : vector<1x128xi1>
    %55 = arith.extui %54 : vector<1x128xi1> to vector<1x128xi32>
    %56 = arith.sitofp %55 : vector<1x128xi32> to vector<1x128xf32>
    %57 = vector.extract_strided_slice %25 {offsets = [0, 2], sizes = [8, 1], strides = [1, 1]} : vector<8x5xf32> to vector<8x1xf32>
    %58 = vector.broadcast %57 : vector<8x1xf32> to vector<8x128xf32>
    %59 = vector.broadcast %56 : vector<1x128xf32> to vector<8x128xf32>
    %60 = arith.mulf %58, %59 : vector<8x128xf32>
    %61 = arith.addf %49, %60 : vector<8x128xf32>
    %c10_i32_15 = arith.constant 10 : i32
    %62 = vector.broadcast %c10_i32_15 : i32 to vector<1x128xi32>
    %63 = arith.cmpi sge, %26, %62 : vector<1x128xi32>
    %c12_i32 = arith.constant 12 : i32
    %64 = vector.broadcast %c12_i32 : i32 to vector<1x128xi32>
    %65 = arith.cmpi slt, %26, %64 : vector<1x128xi32>
    %66 = arith.andi %63, %65 : vector<1x128xi1>
    %67 = arith.extui %66 : vector<1x128xi1> to vector<1x128xi32>
    %68 = arith.sitofp %67 : vector<1x128xi32> to vector<1x128xf32>
    %69 = vector.extract_strided_slice %25 {offsets = [0, 3], sizes = [8, 1], strides = [1, 1]} : vector<8x5xf32> to vector<8x1xf32>
    %70 = vector.broadcast %69 : vector<8x1xf32> to vector<8x128xf32>
    %71 = vector.broadcast %68 : vector<1x128xf32> to vector<8x128xf32>
    %72 = arith.mulf %70, %71 : vector<8x128xf32>
    %73 = arith.addf %61, %72 : vector<8x128xf32>
    %c12_i32_16 = arith.constant 12 : i32
    %74 = vector.broadcast %c12_i32_16 : i32 to vector<1x128xi32>
    %75 = arith.cmpi sge, %26, %74 : vector<1x128xi32>
    %c15_i32 = arith.constant 15 : i32
    %76 = vector.broadcast %c15_i32 : i32 to vector<1x128xi32>
    %77 = arith.cmpi slt, %26, %76 : vector<1x128xi32>
    %78 = arith.andi %75, %77 : vector<1x128xi1>
    %79 = arith.extui %78 : vector<1x128xi1> to vector<1x128xi32>
    %80 = arith.sitofp %79 : vector<1x128xi32> to vector<1x128xf32>
    %81 = vector.extract_strided_slice %25 {offsets = [0, 4], sizes = [8, 1], strides = [1, 1]} : vector<8x5xf32> to vector<8x1xf32>
    %82 = vector.broadcast %81 : vector<8x1xf32> to vector<8x128xf32>
    %83 = vector.broadcast %80 : vector<1x128xf32> to vector<8x128xf32>
    %84 = arith.mulf %82, %83 : vector<8x128xf32>
    %85 = arith.addf %73, %84 : vector<8x128xf32>
    %86 = arith.mulf %14, %85 : vector<8x128xf32>
    %c0_17 = arith.constant 0 : index
    %c0_18 = arith.constant 0 : index
    %87 = vector.load %arg6[%c0_17, %c0_18] : memref<8x128xf32, #tpu.memory_space<vmem>>, vector<8x128xf32>
    tpu.vector_store %arg6[%c0_17, %c0_18], %86 {strides = array<i32>} : memref<8x128xf32, #tpu.memory_space<vmem>>, vector<8x128xf32>,
    return
  }
  func.func @transform_0(%arg0: i32) -> (i32, i32) {
    %c0_i32 = arith.constant 0 : i32
    %c0_i32_0 = arith.constant 0 : i32
    return %arg0, %c0_i32 : i32, i32
  }
  func.func @transform_1(%arg0: i32) -> (i32, i32) {
    %c0_i32 = arith.constant 0 : i32
    %c0_i32_0 = arith.constant 0 : i32
    %c0_i32_1 = arith.constant 0 : i32
    return %c0_i32, %c0_i32_0 : i32, i32
  }
  func.func @transform_2(%arg0: i32) -> (i32, i32) {
    %c0_i32 = arith.constant 0 : i32
    %c0_i32_0 = arith.constant 0 : i32
    %c0_i32_1 = arith.constant 0 : i32
    return %c0_i32, %c0_i32_0 : i32, i32
  }
  func.func @transform_3(%arg0: i32) -> (i32, i32) {
    %c0_i32 = arith.constant 0 : i32
    %c0_i32_0 = arith.constant 0 : i32
    %c0_i32_1 = arith.constant 0 : i32
    return %c0_i32, %c0_i32_0 : i32, i32
  }
  func.func @transform_4(%arg0: i32) -> (i32, i32) {
    %c0_i32 = arith.constant 0 : i32
    %c0_i32_0 = arith.constant 0 : i32
    %c0_i32_1 = arith.constant 0 : i32
    return %c0_i32, %c0_i32_0 : i32, i32
  }
  func.func @transform_5(%arg0: i32) -> (i32, i32) {
    %c0_i32 = arith.constant 0 : i32
    %c0_i32_0 = arith.constant 0 : i32
    return %arg0, %c0_i32 : i32, i32
  }
}

</mosaic_0001>

<bundles_post_ra>
// kernel: hierarchical_forward.1
= control target key start
LH: loop header
LB: loop body
LE: loop exit
PB: predicated region body
PF: predicated region fallthrough
CT: control target
= control target key end

     0   :  { %10 = vsyncpa [#allocation3], 0  ;;  %s5693_s0 = inlined_call_operand.hbm [shape: f32[8,512], index: 0, kind: input, shape index: {}]   ;;  %s5694_s1 = inlined_call_operand.hbm [shape: bf16[512,1536], index: 1, kind: input, shape index: {}]   ;;  %s5695_s2 = inlined_call_operand.hbm [shape: f32[1,1536], index: 2, kind: input, shape index: {}]   ;;  %s5696_s3 = inlined_call_operand.hbm [shape: bf16[1536,128], index: 3, kind: input, shape index: {}]   ;;  %s5697_s4 = inlined_call_operand.hbm [shape: f32[1,128], index: 4, kind: input, shape index: {}]   ;;  %s5698_s5 = inlined_call_operand.hbm [shape: f32[8,128], index: 5, kind: output, shape index: {}]  }
   0x1   :  { %11 = vsyncpa [#allocation6], 0 }
   0x2   :  { %12 = vsyncpa [#allocation9], 0 }
   0x3   :  { %13 = vsyncpa [#allocation4], 0  ;;  %s5530_s18 = smov [#allocation5]  }
   0x4   :  { %s29_s19 = sshll.u32 %s5530_s18, 4  ;;  %s30_s19 = int_to_ptr.vmem [resolvable:$true] %s29_s19 }
   0x5   :  { %s5410_s20 = scalar_lea.vmem %s30_s19, 49152  ;;  %p5415_p1 = scmp.lt.s32.totalorder %s30_s19, %s30_s19 }
   0x6   :  { %p5411_p0 = scmp.ne.s32.totalorder %s30_s19, %s5410_s20  ;;  %p5416_p2 = scmp.lt.s32.totalorder %s5410_s20, %s5410_s20 }
   0x8   :  { %p5417_p3 = por %p5416_p2, %p5415_p1 }
   0xa   :  { %p5418_p4 = pnand %p5417_p3, %p5411_p0 }
   0xc   :  { %5421 = shalt.err (!%p5418_p4)
}
   0xd   :  { %s5531_s21 = smov 768   ;;  %s5532_s22 = smov 48  }
   0xe   :  { %35 = dma.hbm_to_vmem [thread:$0]  %s5694_s1, 49152, %s30_s19, [#allocation6], %s5531_s21, %s5531_s21, %s5532_s22  }
   0xf   :  { %s5533_s25 = smov [#allocation8]  }
  0x10   :  { %s51_s26 = sshll.u32 %s5533_s25, 4  ;;  %s52_s26 = int_to_ptr.vmem [resolvable:$true] %s51_s26 }
  0x11   :  { %s5430_s27 = scalar_lea.vmem %s52_s26, 12288  ;;  %p5435_p6 = scmp.lt.s32.totalorder %s52_s26, %s52_s26 }
  0x12   :  { %p5431_p5 = scmp.ne.s32.totalorder %s52_s26, %s5430_s27  ;;  %p5436_p7 = scmp.lt.s32.totalorder %s5430_s27, %s5430_s27 }
  0x14   :  { %p5437_p8 = por %p5436_p7, %p5435_p6 }
  0x16   :  { %p5438_p9 = pnand %p5437_p8, %p5431_p5 }
  0x18   :  { %5441 = shalt.err (!%p5438_p9)
}
  0x19   :  { %s5534_s28 = smov 64   ;;  %s5535_s29 = smov 4  }
  0x1a   :  { %57 = dma.hbm_to_vmem [thread:$0]  %s5696_s3, 12288, %s52_s26, [#allocation9], %s5534_s28, %s5534_s28, %s5535_s29  }
  0x1b   :  { %s5536_s7 = smov [#allocation2]   ;;  %s5537_s9 = smov [#allocation7]  }
  0x1c   :  { %s20_s8 = sshll.u32 %s5536_s7, 4  ;;  %s42_s1 = sshll.u32 %s5537_s9, 4  ;;  %s21_s8 = int_to_ptr.vmem [resolvable:$true] %s20_s8  ;;  %s43_s1 = int_to_ptr.vmem [resolvable:$true] %s42_s1 }
  0x1d   :  { %s5450_s10 = scalar_lea.vmem %s21_s8, 512  ;;  %p5455_p11 = scmp.lt.s32.totalorder %s21_s8, %s21_s8 }
  0x1e   :  { %p5451_p10 = scmp.ne.s32.totalorder %s21_s8, %s5450_s10  ;;  %p5456_p12 = scmp.lt.s32.totalorder %s5450_s10, %s5450_s10 }
  0x20   :  { %p5457_p13 = por %p5456_p12, %p5455_p11 }
  0x22   :  { %p5458_p0 = pnand %p5457_p13, %p5451_p10 }
  0x24   :  { %5461 = shalt.err (!%p5458_p0)
}
  0x25   :  { %23 = dma.hbm_to_vmem [thread:$0]  %s5693_s0, 512, %s21_s8, [#allocation3]  }
  0x26   :  { %s5470_s13 = scalar_lea.vmem %s43_s1, 192  ;;  %p5475_p2 = scmp.lt.s32.totalorder %s43_s1, %s43_s1 }
  0x27   :  { %p5471_p1 = scmp.ne.s32.totalorder %s43_s1, %s5470_s13  ;;  %p5476_p3 = scmp.lt.s32.totalorder %s5470_s13, %s5470_s13 }
  0x29   :  { %p5477_p4 = por %p5476_p3, %p5475_p2 }
  0x2b   :  { %p5478_p5 = pnand %p5477_p4, %p5471_p1 }
  0x2d   :  { %5481 = shalt.err (!%p5478_p5)
}
  0x2e   :  { %45 = dma.hbm_to_vmem [thread:$0]  %s5695_s2, 192, %s43_s1, [#allocation6]  }
  0x2f   :  { %s5538_s15 = smov [#allocation10]  }
  0x30   :  { %s64_s16 = sshll.u32 %s5538_s15, 4  ;;  %s65_s16 = int_to_ptr.vmem [resolvable:$true] %s64_s16 }
  0x31   :  { %s5490_s17 = scalar_lea.vmem %s65_s16, 16  ;;  %s5494_s18 = scalar_lea.vmem %s65_s16, 32 }
  0x32   :  { %p5491_p6 = scmp.ne.s32.totalorder %s65_s16, %s5490_s17  ;;  %p5495_p7 = scmp.lt.s32.totalorder %s65_s16, %s65_s16 }
  0x33   :  { %p5496_p8 = scmp.lt.s32.totalorder %s5494_s18, %s5490_s17 }
  0x35   :  { %p5497_p9 = por %p5496_p8, %p5495_p7 }
  0x37   :  { %p5498_p10 = pnand %p5497_p9, %p5491_p6 }
  0x39   :  { %5501 = shalt.err (!%p5498_p10)
}
  0x3a   :  { %67 = dma.hbm_to_vmem [thread:$0]  %s5697_s4, 16, %s65_s16, [#allocation9]  }
  0x3b   :  { %5522 = dma.done.wait [#allocation3], 512  }
  0x3c   :  { %5523 = vsyncadd [#allocation3], 4294966784 }
  0x3d   :  { %5524 = dma.done.wait [#allocation6], 49344  }
  0x3e   :  { %5525 = vsyncadd [#allocation6], 4294917952 }
  0x3f   :  { %5526 = dma.done.wait [#allocation9], 12304  }
  0x40   :  { %5527 = vsyncadd [#allocation9], 4294954992  ;;  %v4725_v0 = vld [vmem:[#allocation5 + $0x2a4] ss:$48 sps:$4 sm:$0xff]   ;;  %v4729_v2 = vld [vmem:[#allocation5 + $0x2a0] ss:$48 sps:$4 sm:$0xff]  }
  0x41   :  { %v4727_v1 = vld [vmem:[#allocation5 + $0x8a4] ss:$48 sps:$4 sm:$0xff]   ;;  %2460 = vmatprep.subr.bf16.mxu0 %v4725_v0  ;;  %v4730_v3 = vld [vmem:[#allocation5 + $0x8a0] ss:$48 sps:$4 sm:$0xff]   ;;  %v85_v46 = vld [vmem:[#allocation2 + $0x8] sm:$0xff]  ;;  %vm3991_vm0 = vcmask 162936  }
  0x42   :  { %2501 = vmatprep.subr.bf16.mxu1 %v4727_v1  ;;  %v4731_v4 = vld [vmem:[#allocation5 + $0x244] ss:$48 sps:$4 sm:$0xff]   ;;  %2461 = vmatpush1.bf16.msra.mxu0 %v4729_v2  ;;  %v4735_v6 = vld [vmem:[#allocation5 + $0x240] ss:$48 sps:$4 sm:$0xff]   ;;  %v5592_v49 = vpack.c.bf16 %v85_v46, %v85_v46  ;;  %v87_v50 = vld [vmem:[#allocation2 + $0x18] sm:$0xff]  ;;  %s5539_s2 = smov 113  }
  0x43   :  { %2502 = vmatpush1.bf16.msra.mxu1 %v4730_v3  ;;  %v4733_v5 = vld [vmem:[#allocation5 + $0x844] ss:$48 sps:$4 sm:$0xff]   ;;  %2462 = vmatprep.subr.bf16.mxu0 %v4731_v4  ;;  %v4736_v7 = vld [vmem:[#allocation5 + $0x840] ss:$48 sps:$4 sm:$0xff]   ;;  %v5594_v52 = vpack.c.bf16 %v87_v50, %v87_v50  ;;  %v4875_v46 = vld [vmem:[#allocation5 + $0x548] ss:$48 sps:$4 sm:$0xff]  }
  0x44   :  { %2503 = vmatprep.subr.bf16.mxu1 %v4733_v5  ;;  %v4737_v8 = vld [vmem:[#allocation5 + $0x1e4] ss:$48 sps:$4 sm:$0xff]   ;;  %v4741_v10 = vld [vmem:[#allocation5 + $0x1e0] ss:$48 sps:$4 sm:$0xff]   ;;  %2492 = vmatprep.mubr.bf16.mxu0 %v5592_v49  ;;  %v4886_v50 = vld [vmem:[#allocation5 + $0xaec] ss:$48 sps:$4 sm:$0xff]  }
  0x45   :  { %v4739_v9 = vld [vmem:[#allocation5 + $0x7e4] ss:$48 sps:$4 sm:$0xff]   ;;  %v4742_v11 = vld [vmem:[#allocation5 + $0x7e0] ss:$48 sps:$4 sm:$0xff]   ;;  %2533 = vmatprep.mubr.bf16.mxu1 %v5594_v52  ;;  %vm4002_vm1 = vcmask 39936   ;;  %s5546_s4 = smov [#allocation11]  }
  0x46   :  { %2463 = vmatpush1.bf16.msra.mxu0 %v4735_v6  ;;  %v4743_v12 = vld [vmem:[#allocation5 + $0x184] ss:$48 sps:$4 sm:$0xff]   ;;  %v4747_v14 = vld [vmem:[#allocation5 + $0x180] ss:$48 sps:$4 sm:$0xff]   ;;  %v4823_v6 = vld [vmem:[#allocation5 + $0x2ac] ss:$48 sps:$4 sm:$0xff]  }
  0x47   :  { %2504 = vmatpush1.bf16.msra.mxu1 %v4736_v7  ;;  %2464 = vmatprep.subr.bf16.mxu0 %v4737_v8  ;;  %v4745_v13 = vld [vmem:[#allocation5 + $0x784] ss:$48 sps:$4 sm:$0xff]   ;;  %v4748_v15 = vld [vmem:[#allocation5 + $0x780] ss:$48 sps:$4 sm:$0xff]   ;;  %v4826_v7 = vld [vmem:[#allocation5 + $0x8ac] ss:$48 sps:$4 sm:$0xff]  }
  0x48   :  { %2505 = vmatprep.subr.bf16.mxu1 %v4739_v9  ;;  %v4749_v16 = vld [vmem:[#allocation5 + $0x124] ss:$48 sps:$4 sm:$0xff]   ;;  %v4753_v18 = vld [vmem:[#allocation5 + $0x120] ss:$48 sps:$4 sm:$0xff]   ;;  %s4073_s20 = sshll.u32 %s5546_s4, 4  ;;  %s4074_s20 = int_to_ptr.vmem [resolvable:$true] %s4073_s20 }
  0x49   :  { %v4751_v17 = vld [vmem:[#allocation5 + $0x724] ss:$48 sps:$4 sm:$0xff]   ;;  %v4754_v19 = vld [vmem:[#allocation5 + $0x720] ss:$48 sps:$4 sm:$0xff]   ;;  %s5502_s21 = scalar_lea.vmem %s4074_s20, 128  ;;  %p5507_p12 = scmp.lt.s32.totalorder %s4074_s20, %s4074_s20 }
  0x4a   :  { %2465 = vmatpush1.bf16.msra.mxu0 %v4741_v10  ;;  %v4755_v20 = vld [vmem:[#allocation5 + $0xc4] ss:$48 sps:$4 sm:$0xff]   ;;  %v4759_v22 = vld [vmem:[#allocation5 + $0xc0] ss:$48 sps:$4 sm:$0xff]   ;;  %v4821_v10 = vld [vmem:[#allocation5 + $0x2a8] ss:$48 sps:$4 sm:$0xff]   ;;  %p5503_p11 = scmp.ne.s32.totalorder %s4074_s20, %s5502_s21  ;;  %p5508_p13 = scmp.lt.s32.totalorder %s5502_s21, %s5502_s21 }
  0x4b   :  { %2506 = vmatpush1.bf16.msra.mxu1 %v4742_v11  ;;  %2466 = vmatprep.subr.bf16.mxu0 %v4743_v12  ;;  %v4757_v21 = vld [vmem:[#allocation5 + $0x6c4] ss:$48 sps:$4 sm:$0xff]   ;;  %v4760_v23 = vld [vmem:[#allocation5 + $0x6c0] ss:$48 sps:$4 sm:$0xff]   ;;  %v4824_v11 = vld [vmem:[#allocation5 + $0x8a8] ss:$48 sps:$4 sm:$0xff]  }
  0x4c   :  { %2507 = vmatprep.subr.bf16.mxu1 %v4745_v13  ;;  %v4761_v24 = vld [vmem:[#allocation5 + $0x64] ss:$48 sps:$4 sm:$0xff]   ;;  %v4765_v26 = vld [vmem:[#allocation5 + $0x60] ss:$48 sps:$4 sm:$0xff]   ;;  %v4829_v12 = vld [vmem:[#allocation5 + $0x24c] ss:$48 sps:$4 sm:$0xff]   ;;  %p5509_p0 = por %p5508_p13, %p5507_p12 }
  0x4d   :  { %v4763_v25 = vld [vmem:[#allocation5 + $0x664] ss:$48 sps:$4 sm:$0xff]   ;;  %v4766_v27 = vld [vmem:[#allocation5 + $0x660] ss:$48 sps:$4 sm:$0xff]   ;;  %v4832_v13 = vld [vmem:[#allocation5 + $0x84c] ss:$48 sps:$4 sm:$0xff]  }
  0x4e   :  { %2467 = vmatpush1.bf16.msra.mxu0 %v4747_v14  ;;  %v4767_v28 = vld [vmem:[#allocation5 + $0x4] ss:$48 sps:$4 sm:$0xff]   ;;  %v4771_v30 = vld [vmem:[#allocation5] ss:$48 sps:$4 sm:$0xff]   ;;  %v4827_v14 = vld [vmem:[#allocation5 + $0x248] ss:$48 sps:$4 sm:$0xff]   ;;  %p5510_p1 = pnand %p5509_p0, %p5503_p11 }
  0x4f   :  { %2508 = vmatpush1.bf16.msra.mxu1 %v4748_v15  ;;  %2468 = vmatprep.subr.bf16.mxu0 %v4749_v16  ;;  %v4769_v29 = vld [vmem:[#allocation5 + $0x604] ss:$48 sps:$4 sm:$0xff]   ;;  %v4772_v31 = vld [vmem:[#allocation5 + $0x600] ss:$48 sps:$4 sm:$0xff]   ;;  %v4830_v15 = vld [vmem:[#allocation5 + $0x848] ss:$48 sps:$4 sm:$0xff]  }
  0x50   :  { %2509 = vmatprep.subr.bf16.mxu1 %v4751_v17  ;;  %v4773_v32 = vld [vmem:[#allocation5 + $0x5a4] ss:$48 sps:$4 sm:$0xff]   ;;  %v4777_v34 = vld [vmem:[#allocation5 + $0x5a0] ss:$48 sps:$4 sm:$0xff]   ;;  %v4835_v16 = vld [vmem:[#allocation5 + $0x1ec] ss:$48 sps:$4 sm:$0xff]  }
  0x51   :  { %v4775_v33 = vld [vmem:[#allocation5 + $0xba4] ss:$48 sps:$4 sm:$0xff]   ;;  %v4778_v35 = vld [vmem:[#allocation5 + $0xba0] ss:$48 sps:$4 sm:$0xff]   ;;  %v4838_v17 = vld [vmem:[#allocation5 + $0x7ec] ss:$48 sps:$4 sm:$0xff]  }
  0x52   :  { %2469 = vmatpush1.bf16.msra.mxu0 %v4753_v18  ;;  %v4779_v36 = vld [vmem:[#allocation5 + $0x544] ss:$48 sps:$4 sm:$0xff]   ;;  %v4783_v38 = vld [vmem:[#allocation5 + $0x540] ss:$48 sps:$4 sm:$0xff]   ;;  %v4833_v18 = vld [vmem:[#allocation5 + $0x1e8] ss:$48 sps:$4 sm:$0xff]  }
  0x53   :  { %2510 = vmatpush1.bf16.msra.mxu1 %v4754_v19  ;;  %2470 = vmatprep.subr.bf16.mxu0 %v4755_v20  ;;  %v4781_v37 = vld [vmem:[#allocation5 + $0xb44] ss:$48 sps:$4 sm:$0xff]   ;;  %v4784_v39 = vld [vmem:[#allocation5 + $0xb40] ss:$48 sps:$4 sm:$0xff]   ;;  %v4836_v19 = vld [vmem:[#allocation5 + $0x7e8] ss:$48 sps:$4 sm:$0xff]  }
  0x54   :  { %2511 = vmatprep.subr.bf16.mxu1 %v4757_v21  ;;  %v4785_v40 = vld [vmem:[#allocation5 + $0x4e4] ss:$48 sps:$4 sm:$0xff]   ;;  %v4789_v42 = vld [vmem:[#allocation5 + $0x4e0] ss:$48 sps:$4 sm:$0xff]   ;;  %v4841_v20 = vld [vmem:[#allocation5 + $0x18c] ss:$48 sps:$4 sm:$0xff]  }
  0x55   :  { %v4787_v41 = vld [vmem:[#allocation5 + $0xae4] ss:$48 sps:$4 sm:$0xff]   ;;  %v4790_v43 = vld [vmem:[#allocation5 + $0xae0] ss:$48 sps:$4 sm:$0xff]   ;;  %v4844_v21 = vld [vmem:[#allocation5 + $0x78c] ss:$48 sps:$4 sm:$0xff]  }
  0x56   :  { %2471 = vmatpush1.bf16.msra.mxu0 %v4759_v22  ;;  %v4791_v44 = vld [vmem:[#allocation5 + $0x484] ss:$48 sps:$4 sm:$0xff]   ;;  %v4795_v47 = vld [vmem:[#allocation5 + $0x480] ss:$48 sps:$4 sm:$0xff]   ;;  %v4839_v22 = vld [vmem:[#allocation5 + $0x188] ss:$48 sps:$4 sm:$0xff]  }
  0x57   :  { %2512 = vmatpush1.bf16.msra.mxu1 %v4760_v23  ;;  %2472 = vmatprep.subr.bf16.mxu0 %v4761_v24  ;;  %v4793_v45 = vld [vmem:[#allocation5 + $0xa84] ss:$48 sps:$4 sm:$0xff]   ;;  %v4796_v48 = vld [vmem:[#allocation5 + $0xa80] ss:$48 sps:$4 sm:$0xff]   ;;  %v4842_v23 = vld [vmem:[#allocation5 + $0x788] ss:$48 sps:$4 sm:$0xff]  }
  0x58   :  { %2513 = vmatprep.subr.bf16.mxu1 %v4763_v25  ;;  %v4797_v51 = vld [vmem:[#allocation5 + $0x424] ss:$48 sps:$4 sm:$0xff]   ;;  %v4801_v54 = vld [vmem:[#allocation5 + $0x420] ss:$48 sps:$4 sm:$0xff]   ;;  %v4847_v24 = vld [vmem:[#allocation5 + $0x12c] ss:$48 sps:$4 sm:$0xff]  }
  0x59   :  { %v4799_v53 = vld [vmem:[#allocation5 + $0xa24] ss:$48 sps:$4 sm:$0xff]   ;;  %v4802_v55 = vld [vmem:[#allocation5 + $0xa20] ss:$48 sps:$4 sm:$0xff]   ;;  %v4850_v25 = vld [vmem:[#allocation5 + $0x72c] ss:$48 sps:$4 sm:$0xff]  }
  0x5a   :  { %2473 = vmatpush1.bf16.msra.mxu0 %v4765_v26  ;;  %v4803_v56 = vld [vmem:[#allocation5 + $0x3c4] ss:$48 sps:$4 sm:$0xff]   ;;  %v4807_v58 = vld [vmem:[#allocation5 + $0x3c0] ss:$48 sps:$4 sm:$0xff]   ;;  %v4845_v26 = vld [vmem:[#allocation5 + $0x128] ss:$48 sps:$4 sm:$0xff]  }
  0x5b   :  { %2514 = vmatpush1.bf16.msra.mxu1 %v4766_v27  ;;  %2474 = vmatprep.subr.bf16.mxu0 %v4767_v28  ;;  %v4805_v57 = vld [vmem:[#allocation5 + $0x9c4] ss:$48 sps:$4 sm:$0xff]   ;;  %v4808_v59 = vld [vmem:[#allocation5 + $0x9c0] ss:$48 sps:$4 sm:$0xff]   ;;  %v4848_v27 = vld [vmem:[#allocation5 + $0x728] ss:$48 sps:$4 sm:$0xff]  }
  0x5c   :  { %2515 = vmatprep.subr.bf16.mxu1 %v4769_v29  ;;  %v4809_v60 = vld [vmem:[#allocation5 + $0x364] ss:$48 sps:$4 sm:$0xff]   ;;  %v4813_v62 = vld [vmem:[#allocation5 + $0x360] ss:$48 sps:$4 sm:$0xff]   ;;  %v4853_v28 = vld [vmem:[#allocation5 + $0xcc] ss:$48 sps:$4 sm:$0xff]  }
  0x5d   :  { %v4811_v61 = vld [vmem:[#allocation5 + $0x964] ss:$48 sps:$4 sm:$0xff]   ;;  %v4814_v63 = vld [vmem:[#allocation5 + $0x960] ss:$48 sps:$4 sm:$0xff]   ;;  %v4856_v29 = vld [vmem:[#allocation5 + $0x6cc] ss:$48 sps:$4 sm:$0xff]  }
  0x5e   :  { %2475 = vmatpush1.bf16.msra.mxu0 %v4771_v30  ;;  %v4815_v0 = vld [vmem:[#allocation5 + $0x304] ss:$48 sps:$4 sm:$0xff]   ;;  %v4819_v2 = vld [vmem:[#allocation5 + $0x300] ss:$48 sps:$4 sm:$0xff]   ;;  %v4851_v30 = vld [vmem:[#allocation5 + $0xc8] ss:$48 sps:$4 sm:$0xff]  }
  0x5f   :  { %2516 = vmatpush1.bf16.msra.mxu1 %v4772_v31  ;;  %2476 = vmatprep.subr.bf16.mxu0 %v4773_v32  ;;  %v4817_v1 = vld [vmem:[#allocation5 + $0x904] ss:$48 sps:$4 sm:$0xff]   ;;  %v4820_v3 = vld [vmem:[#allocation5 + $0x900] ss:$48 sps:$4 sm:$0xff]   ;;  %v4854_v31 = vld [vmem:[#allocation5 + $0x6c8] ss:$48 sps:$4 sm:$0xff]  }
  0x60   :  { %2517 = vmatprep.subr.bf16.mxu1 %v4775_v33  ;;  %v84_v4 = vld [vmem:[#allocation2] sm:$0xff]  ;;  %v86_v5 = vld [vmem:[#allocation2 + $0x10] sm:$0xff]  ;;  %v4859_v32 = vld [vmem:[#allocation5 + $0x6c] ss:$48 sps:$4 sm:$0xff]  }
  0x61   :  { %v5598_v8 = vpack.c.bf16 %v84_v4, %v84_v4  ;;  %v5600_v9 = vpack.c.bf16 %v86_v5, %v86_v5  ;;  %v4862_v33 = vld [vmem:[#allocation5 + $0x66c] ss:$48 sps:$4 sm:$0xff]   ;;  %v4905_v4 = vld [vmem:[#allocation5 + $0x368] ss:$48 sps:$4 sm:$0xff]  }
  0x62   :  { %2477 = vmatpush2.bf16.msra.mxu0 %v4777_v34  ;;  %v4857_v34 = vld [vmem:[#allocation5 + $0x68] ss:$48 sps:$4 sm:$0xff]  }
  0x63   :  { %2518 = vmatpush2.bf16.msra.mxu1 %v4778_v35  ;;  %2478 = vmatprep.subr.bf16.mxu0 %v4779_v36  ;;  %v4860_v35 = vld [vmem:[#allocation5 + $0x668] ss:$48 sps:$4 sm:$0xff]   ;;  %v4865_v36 = vld [vmem:[#allocation5 + $0xc] ss:$48 sps:$4 sm:$0xff]  }
  0x64   :  { %2519 = vmatprep.subr.bf16.mxu1 %v4781_v37  ;;  %v4868_v37 = vld [vmem:[#allocation5 + $0x60c] ss:$48 sps:$4 sm:$0xff]   ;;  %v4908_v5 = vld [vmem:[#allocation5 + $0x968] ss:$48 sps:$4 sm:$0xff]  }
  0x66   :  { %2479 = vmatpush2.bf16.msra.mxu0 %v4783_v38  ;;  %v4863_v38 = vld [vmem:[#allocation5 + $0x8] ss:$48 sps:$4 sm:$0xff]  }
  0x67   :  { %2520 = vmatpush2.bf16.msra.mxu1 %v4784_v39  ;;  %2480 = vmatprep.subr.bf16.mxu0 %v4785_v40  ;;  %v4866_v39 = vld [vmem:[#allocation5 + $0x608] ss:$48 sps:$4 sm:$0xff]   ;;  %v4871_v40 = vld [vmem:[#allocation5 + $0x5ac] ss:$48 sps:$4 sm:$0xff]  }
  0x68   :  { %2521 = vmatprep.subr.bf16.mxu1 %v4787_v41  ;;  %v4874_v41 = vld [vmem:[#allocation5 + $0xbac] ss:$48 sps:$4 sm:$0xff]  }
  0x6a   :  { %2481 = vmatpush2.bf16.msra.mxu0 %v4789_v42  ;;  %v4869_v42 = vld [vmem:[#allocation5 + $0x5a8] ss:$48 sps:$4 sm:$0xff]  }
  0x6b   :  { %2522 = vmatpush2.bf16.msra.mxu1 %v4790_v43  ;;  %2482 = vmatprep.subr.bf16.mxu0 %v4791_v44  ;;  %v4872_v43 = vld [vmem:[#allocation5 + $0xba8] ss:$48 sps:$4 sm:$0xff]   ;;  %v4877_v44 = vld [vmem:[#allocation5 + $0x54c] ss:$48 sps:$4 sm:$0xff]  }
  0x6c   :  { %2523 = vmatprep.subr.bf16.mxu1 %v4793_v45  ;;  %v4880_v45 = vld [vmem:[#allocation5 + $0xb4c] ss:$48 sps:$4 sm:$0xff]  }
  0x6e   :  { %2483 = vmatpush2.bf16.msra.mxu0 %v4795_v47  ;;  %v4878_v47 = vld [vmem:[#allocation5 + $0xb48] ss:$48 sps:$4 sm:$0xff]  }
  0x6f   :  { %2524 = vmatpush2.bf16.msra.mxu1 %v4796_v48  ;;  %2484 = vmatprep.subr.bf16.mxu0 %v4797_v51  ;;  %v4883_v48 = vld [vmem:[#allocation5 + $0x4ec] ss:$48 sps:$4 sm:$0xff]   ;;  %v4881_v51 = vld [vmem:[#allocation5 + $0x4e8] ss:$48 sps:$4 sm:$0xff]  }
  0x70   :  { %2525 = vmatprep.subr.bf16.mxu1 %v4799_v53  ;;  %v4884_v53 = vld [vmem:[#allocation5 + $0xae8] ss:$48 sps:$4 sm:$0xff]  }
  0x72   :  { %2485 = vmatpush2.bf16.msra.mxu0 %v4801_v54  ;;  %v4889_v54 = vld [vmem:[#allocation5 + $0x48c] ss:$48 sps:$4 sm:$0xff]  }
  0x73   :  { %2526 = vmatpush2.bf16.msra.mxu1 %v4802_v55  ;;  %2486 = vmatprep.subr.bf16.mxu0 %v4803_v56  ;;  %v4892_v55 = vld [vmem:[#allocation5 + $0xa8c] ss:$48 sps:$4 sm:$0xff]   ;;  %v4887_v56 = vld [vmem:[#allocation5 + $0x488] ss:$48 sps:$4 sm:$0xff]  }
  0x74   :  { %2527 = vmatprep.subr.bf16.mxu1 %v4805_v57  ;;  %v4890_v57 = vld [vmem:[#allocation5 + $0xa88] ss:$48 sps:$4 sm:$0xff]  }
  0x76   :  { %2487 = vmatpush2.bf16.msra.mxu0 %v4807_v58  ;;  %v4895_v58 = vld [vmem:[#allocation5 + $0x42c] ss:$48 sps:$4 sm:$0xff]  }
  0x77   :  { %2528 = vmatpush2.bf16.msra.mxu1 %v4808_v59  ;;  %2488 = vmatprep.subr.bf16.mxu0 %v4809_v60  ;;  %v4898_v59 = vld [vmem:[#allocation5 + $0xa2c] ss:$48 sps:$4 sm:$0xff]   ;;  %v4893_v60 = vld [vmem:[#allocation5 + $0x428] ss:$48 sps:$4 sm:$0xff]  }
  0x78   :  { %2529 = vmatprep.subr.bf16.mxu1 %v4811_v61  ;;  %v4896_v61 = vld [vmem:[#allocation5 + $0xa28] ss:$48 sps:$4 sm:$0xff]  }
  0x7a   :  { %2489 = vmatpush2.bf16.msra.mxu0 %v4813_v62  ;;  %v4901_v62 = vld [vmem:[#allocation5 + $0x3cc] ss:$48 sps:$4 sm:$0xff]  }
  0x7b   :  { %2530 = vmatpush2.bf16.msra.mxu1 %v4814_v63  ;;  %2490 = vmatprep.subr.bf16.mxu0 %v4815_v0  ;;  %v4904_v63 = vld [vmem:[#allocation5 + $0x9cc] ss:$48 sps:$4 sm:$0xff]   ;;  %v4899_v0 = vld [vmem:[#allocation5 + $0x3c8] ss:$48 sps:$4 sm:$0xff]  }
  0x7c   :  { %2531 = vmatprep.subr.bf16.mxu1 %v4817_v1  ;;  %v4902_v1 = vld [vmem:[#allocation5 + $0x9c8] ss:$48 sps:$4 sm:$0xff]  }
  0x7e   :  { %2491 = vmatpush2.bf16.msra.mxu0 %v4819_v2  ;;  %v4907_v2 = vld [vmem:[#allocation5 + $0x36c] ss:$48 sps:$4 sm:$0xff]  }
  0x7f   :  { %2532 = vmatpush2.bf16.msra.mxu1 %v4820_v3  ;;  %2542 = vmatprep.subr.bf16.mxu0 %v4823_v6  ;;  %v4910_v3 = vld [vmem:[#allocation5 + $0x96c] ss:$48 sps:$4 sm:$0xff]  }
  0x80   :  { %2583 = vmatprep.subr.bf16.mxu1 %v4826_v7  ;;  %v4913_v6 = vld [vmem:[#allocation5 + $0x30c] ss:$48 sps:$4 sm:$0xff]  }
  0x81   :  { %2493 = vmatmul.mubr.bf16.vlgmr.msra.gmra.mxu0 %v5598_v8  ;;  %v4916_v7 = vld [vmem:[#allocation5 + $0x90c] ss:$48 sps:$4 sm:$0xff]  }
  0x82   :  { %2534 = vmatmul.mubr.bf16.vlgmr.msra.gmra.mxu1 %v5600_v9  ;;  %2543 = vmatpush1.bf16.msra.mxu0 %v4821_v10  ;;  %v4911_v10 = vld [vmem:[#allocation5 + $0x308] ss:$48 sps:$4 sm:$0xff]  }
  0x83   :  { %2584 = vmatpush1.bf16.msra.mxu1 %v4824_v11  ;;  %2544 = vmatprep.subr.bf16.mxu0 %v4829_v12  ;;  %v4914_v11 = vld [vmem:[#allocation5 + $0x908] ss:$48 sps:$4 sm:$0xff]   ;;  %v4919_v12 = vld [vmem:[#allocation5 + $0x2b4] ss:$48 sps:$4 sm:$0xff]  }
  0x84   :  { %2585 = vmatprep.subr.bf16.mxu1 %v4832_v13  ;;  %2574 = vmatprep.mubr.bf16.mxu0 %v5592_v49  ;;  %v4922_v13 = vld [vmem:[#allocation5 + $0x8b4] ss:$48 sps:$4 sm:$0xff]  }
  0x85   :  { %2615 = vmatprep.mubr.bf16.mxu1 %v5594_v52 }
  0x86   :  { %2545 = vmatpush1.bf16.msra.mxu0 %v4827_v14  ;;  %v4917_v14 = vld [vmem:[#allocation5 + $0x2b0] ss:$48 sps:$4 sm:$0xff]  }
  0x87   :  { %2586 = vmatpush1.bf16.msra.mxu1 %v4830_v15  ;;  %2546 = vmatprep.subr.bf16.mxu0 %v4835_v16  ;;  %v4920_v15 = vld [vmem:[#allocation5 + $0x8b0] ss:$48 sps:$4 sm:$0xff]   ;;  %v4925_v16 = vld [vmem:[#allocation5 + $0x254] ss:$48 sps:$4 sm:$0xff]  }
  0x88   :  { %2587 = vmatprep.subr.bf16.mxu1 %v4838_v17  ;;  %v4928_v17 = vld [vmem:[#allocation5 + $0x854] ss:$48 sps:$4 sm:$0xff]  }
  0x8a   :  { %2547 = vmatpush1.bf16.msra.mxu0 %v4833_v18  ;;  %v4923_v18 = vld [vmem:[#allocation5 + $0x250] ss:$48 sps:$4 sm:$0xff]  }
  0x8b   :  { %2588 = vmatpush1.bf16.msra.mxu1 %v4836_v19  ;;  %2548 = vmatprep.subr.bf16.mxu0 %v4841_v20  ;;  %v4926_v19 = vld [vmem:[#allocation5 + $0x850] ss:$48 sps:$4 sm:$0xff]   ;;  %v4931_v20 = vld [vmem:[#allocation5 + $0x1f4] ss:$48 sps:$4 sm:$0xff]  }
  0x8c   :  { %2589 = vmatprep.subr.bf16.mxu1 %v4844_v21  ;;  %v4934_v21 = vld [vmem:[#allocation5 + $0x7f4] ss:$48 sps:$4 sm:$0xff]  }
  0x8e   :  { %2549 = vmatpush1.bf16.msra.mxu0 %v4839_v22  ;;  %v4929_v22 = vld [vmem:[#allocation5 + $0x1f0] ss:$48 sps:$4 sm:$0xff]  }
  0x8f   :  { %2590 = vmatpush1.bf16.msra.mxu1 %v4842_v23  ;;  %2550 = vmatprep.subr.bf16.mxu0 %v4847_v24  ;;  %v4932_v23 = vld [vmem:[#allocation5 + $0x7f0] ss:$48 sps:$4 sm:$0xff]   ;;  %v4937_v24 = vld [vmem:[#allocation5 + $0x194] ss:$48 sps:$4 sm:$0xff]  }
  0x90   :  { %2591 = vmatprep.subr.bf16.mxu1 %v4850_v25  ;;  %v4940_v25 = vld [vmem:[#allocation5 + $0x794] ss:$48 sps:$4 sm:$0xff]  }
  0x92   :  { %2551 = vmatpush1.bf16.msra.mxu0 %v4845_v26  ;;  %v4935_v26 = vld [vmem:[#allocation5 + $0x190] ss:$48 sps:$4 sm:$0xff]  }
  0x93   :  { %2592 = vmatpush1.bf16.msra.mxu1 %v4848_v27  ;;  %2552 = vmatprep.subr.bf16.mxu0 %v4853_v28  ;;  %v4938_v27 = vld [vmem:[#allocation5 + $0x790] ss:$48 sps:$4 sm:$0xff]   ;;  %v4943_v28 = vld [vmem:[#allocation5 + $0x134] ss:$48 sps:$4 sm:$0xff]  }
  0x94   :  { %2593 = vmatprep.subr.bf16.mxu1 %v4856_v29  ;;  %v4946_v29 = vld [vmem:[#allocation5 + $0x734] ss:$48 sps:$4 sm:$0xff]  }
  0x96   :  { %2553 = vmatpush1.bf16.msra.mxu0 %v4851_v30  ;;  %v4941_v30 = vld [vmem:[#allocation5 + $0x130] ss:$48 sps:$4 sm:$0xff]  }
  0x97   :  { %2594 = vmatpush1.bf16.msra.mxu1 %v4854_v31  ;;  %2554 = vmatprep.subr.bf16.mxu0 %v4859_v32  ;;  %v4944_v31 = vld [vmem:[#allocation5 + $0x730] ss:$48 sps:$4 sm:$0xff]   ;;  %v4949_v32 = vld [vmem:[#allocation5 + $0xd4] ss:$48 sps:$4 sm:$0xff]  }
  0x98   :  { %2595 = vmatprep.subr.bf16.mxu1 %v4862_v33  ;;  %v4952_v33 = vld [vmem:[#allocation5 + $0x6d4] ss:$48 sps:$4 sm:$0xff]  }
  0x9a   :  { %2555 = vmatpush1.bf16.msra.mxu0 %v4857_v34  ;;  %v4947_v34 = vld [vmem:[#allocation5 + $0xd0] ss:$48 sps:$4 sm:$0xff]  }
  0x9b   :  { %2596 = vmatpush1.bf16.msra.mxu1 %v4860_v35  ;;  %2556 = vmatprep.subr.bf16.mxu0 %v4865_v36  ;;  %v4950_v35 = vld [vmem:[#allocation5 + $0x6d0] ss:$48 sps:$4 sm:$0xff]   ;;  %v4955_v36 = vld [vmem:[#allocation5 + $0x74] ss:$48 sps:$4 sm:$0xff]  }
  0x9c   :  { %2597 = vmatprep.subr.bf16.mxu1 %v4868_v37  ;;  %v4958_v37 = vld [vmem:[#allocation5 + $0x674] ss:$48 sps:$4 sm:$0xff]  }
  0x9e   :  { %2557 = vmatpush1.bf16.msra.mxu0 %v4863_v38  ;;  %v4953_v38 = vld [vmem:[#allocation5 + $0x70] ss:$48 sps:$4 sm:$0xff]  }
  0x9f   :  { %2598 = vmatpush1.bf16.msra.mxu1 %v4866_v39  ;;  %2558 = vmatprep.subr.bf16.mxu0 %v4871_v40  ;;  %v4956_v39 = vld [vmem:[#allocation5 + $0x670] ss:$48 sps:$4 sm:$0xff]   ;;  %v4961_v40 = vld [vmem:[#allocation5 + $0x14] ss:$48 sps:$4 sm:$0xff]  }
  0xa0   :  { %2599 = vmatprep.subr.bf16.mxu1 %v4874_v41  ;;  %v4964_v41 = vld [vmem:[#allocation5 + $0x614] ss:$48 sps:$4 sm:$0xff]  }
  0xa2   :  { %2559 = vmatpush2.bf16.msra.mxu0 %v4869_v42  ;;  %v4959_v42 = vld [vmem:[#allocation5 + $0x10] ss:$48 sps:$4 sm:$0xff]  }
  0xa3   :  { %2600 = vmatpush2.bf16.msra.mxu1 %v4872_v43  ;;  %2560 = vmatprep.subr.bf16.mxu0 %v4877_v44  ;;  %v4962_v43 = vld [vmem:[#allocation5 + $0x610] ss:$48 sps:$4 sm:$0xff]   ;;  %v4967_v44 = vld [vmem:[#allocation5 + $0x5b4] ss:$48 sps:$4 sm:$0xff]  }
  0xa4   :  { %2601 = vmatprep.subr.bf16.mxu1 %v4880_v45  ;;  %v4970_v45 = vld [vmem:[#allocation5 + $0xbb4] ss:$48 sps:$4 sm:$0xff]  }
  0xa6   :  { %2561 = vmatpush2.bf16.msra.mxu0 %v4875_v46  ;;  %v4965_v46 = vld [vmem:[#allocation5 + $0x5b0] ss:$48 sps:$4 sm:$0xff]  }
  0xa7   :  { %2602 = vmatpush2.bf16.msra.mxu1 %v4878_v47  ;;  %2562 = vmatprep.subr.bf16.mxu0 %v4883_v48  ;;  %v4968_v47 = vld [vmem:[#allocation5 + $0xbb0] ss:$48 sps:$4 sm:$0xff]   ;;  %v4973_v48 = vld [vmem:[#allocation5 + $0x554] ss:$48 sps:$4 sm:$0xff]  }
  0xa8   :  { %2603 = vmatprep.subr.bf16.mxu1 %v4886_v50  ;;  %v4976_v50 = vld [vmem:[#allocation5 + $0xb54] ss:$48 sps:$4 sm:$0xff]  }
  0xaa   :  { %2563 = vmatpush2.bf16.msra.mxu0 %v4881_v51  ;;  %v4971_v51 = vld [vmem:[#allocation5 + $0x550] ss:$48 sps:$4 sm:$0xff]  }
  0xab   :  { %2604 = vmatpush2.bf16.msra.mxu1 %v4884_v53  ;;  %2564 = vmatprep.subr.bf16.mxu0 %v4889_v54  ;;  %v4974_v53 = vld [vmem:[#allocation5 + $0xb50] ss:$48 sps:$4 sm:$0xff]   ;;  %v4979_v54 = vld [vmem:[#allocation5 + $0x4f4] ss:$48 sps:$4 sm:$0xff]  }
  0xac   :  { %2605 = vmatprep.subr.bf16.mxu1 %v4892_v55  ;;  %v4982_v55 = vld [vmem:[#allocation5 + $0xaf4] ss:$48 sps:$4 sm:$0xff]  }
  0xae   :  { %2565 = vmatpush2.bf16.msra.mxu0 %v4887_v56  ;;  %v4977_v56 = vld [vmem:[#allocation5 + $0x4f0] ss:$48 sps:$4 sm:$0xff]  }
  0xaf   :  { %2606 = vmatpush2.bf16.msra.mxu1 %v4890_v57  ;;  %2566 = vmatprep.subr.bf16.mxu0 %v4895_v58  ;;  %v4980_v57 = vld [vmem:[#allocation5 + $0xaf0] ss:$48 sps:$4 sm:$0xff]   ;;  %v4985_v58 = vld [vmem:[#allocation5 + $0x494] ss:$48 sps:$4 sm:$0xff]  }
  0xb0   :  { %2607 = vmatprep.subr.bf16.mxu1 %v4898_v59  ;;  %v4988_v59 = vld [vmem:[#allocation5 + $0xa94] ss:$48 sps:$4 sm:$0xff]  }
  0xb2   :  { %2567 = vmatpush2.bf16.msra.mxu0 %v4893_v60  ;;  %v4983_v60 = vld [vmem:[#allocation5 + $0x490] ss:$48 sps:$4 sm:$0xff]  }
  0xb3   :  { %2608 = vmatpush2.bf16.msra.mxu1 %v4896_v61  ;;  %2568 = vmatprep.subr.bf16.mxu0 %v4901_v62  ;;  %v4986_v61 = vld [vmem:[#allocation5 + $0xa90] ss:$48 sps:$4 sm:$0xff]   ;;  %v4991_v62 = vld [vmem:[#allocation5 + $0x434] ss:$48 sps:$4 sm:$0xff]  }
  0xb4   :  { %2609 = vmatprep.subr.bf16.mxu1 %v4904_v63  ;;  %v4994_v63 = vld [vmem:[#allocation5 + $0xa34] ss:$48 sps:$4 sm:$0xff]  }
  0xb6   :  { %2569 = vmatpush2.bf16.msra.mxu0 %v4899_v0  ;;  %v4989_v0 = vld [vmem:[#allocation5 + $0x430] ss:$48 sps:$4 sm:$0xff]  }
  0xb7   :  { %2610 = vmatpush2.bf16.msra.mxu1 %v4902_v1  ;;  %2570 = vmatprep.subr.bf16.mxu0 %v4907_v2  ;;  %v4992_v1 = vld [vmem:[#allocation5 + $0xa30] ss:$48 sps:$4 sm:$0xff]   ;;  %v4997_v2 = vld [vmem:[#allocation5 + $0x3d4] ss:$48 sps:$4 sm:$0xff]  }
  0xb8   :  { %2611 = vmatprep.subr.bf16.mxu1 %v4910_v3  ;;  %v5000_v3 = vld [vmem:[#allocation5 + $0x9d4] ss:$48 sps:$4 sm:$0xff]  }
  0xba   :  { %2571 = vmatpush2.bf16.msra.mxu0 %v4905_v4  ;;  %v4995_v4 = vld [vmem:[#allocation5 + $0x3d0] ss:$48 sps:$4 sm:$0xff]  }
  0xbb   :  { %2612 = vmatpush2.bf16.msra.mxu1 %v4908_v5  ;;  %2572 = vmatprep.subr.bf16.mxu0 %v4913_v6  ;;  %v4998_v5 = vld [vmem:[#allocation5 + $0x9d0] ss:$48 sps:$4 sm:$0xff]   ;;  %v5003_v6 = vld [vmem:[#allocation5 + $0x374] ss:$48 sps:$4 sm:$0xff]  }
  0xbc   :  { %2613 = vmatprep.subr.bf16.mxu1 %v4916_v7  ;;  %v5006_v7 = vld [vmem:[#allocation5 + $0x974] ss:$48 sps:$4 sm:$0xff]  }
  0xbe   :  { %2573 = vmatpush2.bf16.msra.mxu0 %v4911_v10  ;;  %v5001_v10 = vld [vmem:[#allocation5 + $0x370] ss:$48 sps:$4 sm:$0xff]  }
  0xbf   :  { %2614 = vmatpush2.bf16.msra.mxu1 %v4914_v11  ;;  %2624 = vmatprep.subr.bf16.mxu0 %v4919_v12  ;;  %v5004_v11 = vld [vmem:[#allocation5 + $0x970] ss:$48 sps:$4 sm:$0xff]   ;;  %v5009_v12 = vld [vmem:[#allocation5 + $0x314] ss:$48 sps:$4 sm:$0xff]  }
  0xc0   :  { %2665 = vmatprep.subr.bf16.mxu1 %v4922_v13  ;;  %v5012_v13 = vld [vmem:[#allocation5 + $0x914] ss:$48 sps:$4 sm:$0xff]  }
  0xc1   :  { %2575 = vmatmul.mubr.bf16.vlgmr.msra.gmra.mxu0 %v5598_v8 }
  0xc2   :  { %2616 = vmatmul.mubr.bf16.vlgmr.msra.gmra.mxu1 %v5600_v9  ;;  %2625 = vmatpush1.bf16.msra.mxu0 %v4917_v14  ;;  %v5007_v14 = vld [vmem:[#allocation5 + $0x310] ss:$48 sps:$4 sm:$0xff]  }
  0xc3   :  { %2666 = vmatpush1.bf16.msra.mxu1 %v4920_v15  ;;  %2626 = vmatprep.subr.bf16.mxu0 %v4925_v16  ;;  %v5010_v15 = vld [vmem:[#allocation5 + $0x910] ss:$48 sps:$4 sm:$0xff]   ;;  %v5015_v16 = vld [vmem:[#allocation5 + $0x2bc] ss:$48 sps:$4 sm:$0xff]  }
  0xc4   :  { %2667 = vmatprep.subr.bf16.mxu1 %v4928_v17  ;;  %2656 = vmatprep.mubr.bf16.mxu0 %v5592_v49  ;;  %v5018_v17 = vld [vmem:[#allocation5 + $0x8bc] ss:$48 sps:$4 sm:$0xff]  }
  0xc5   :  { %2697 = vmatprep.mubr.bf16.mxu1 %v5594_v52 }
  0xc6   :  { %2627 = vmatpush1.bf16.msra.mxu0 %v4923_v18  ;;  %v5013_v18 = vld [vmem:[#allocation5 + $0x2b8] ss:$48 sps:$4 sm:$0xff]  }
  0xc7   :  { %2668 = vmatpush1.bf16.msra.mxu1 %v4926_v19  ;;  %2628 = vmatprep.subr.bf16.mxu0 %v4931_v20  ;;  %v5016_v19 = vld [vmem:[#allocation5 + $0x8b8] ss:$48 sps:$4 sm:$0xff]   ;;  %v5021_v20 = vld [vmem:[#allocation5 + $0x25c] ss:$48 sps:$4 sm:$0xff]  }
  0xc8   :  { %2669 = vmatprep.subr.bf16.mxu1 %v4934_v21  ;;  %v5024_v21 = vld [vmem:[#allocation5 + $0x85c] ss:$48 sps:$4 sm:$0xff]  }
  0xca   :  { %2629 = vmatpush1.bf16.msra.mxu0 %v4929_v22  ;;  %v5019_v22 = vld [vmem:[#allocation5 + $0x258] ss:$48 sps:$4 sm:$0xff]  }
  0xcb   :  { %2670 = vmatpush1.bf16.msra.mxu1 %v4932_v23  ;;  %2630 = vmatprep.subr.bf16.mxu0 %v4937_v24  ;;  %v5022_v23 = vld [vmem:[#allocation5 + $0x858] ss:$48 sps:$4 sm:$0xff]   ;;  %v5027_v24 = vld [vmem:[#allocation5 + $0x1fc] ss:$48 sps:$4 sm:$0xff]  }
  0xcc   :  { %2671 = vmatprep.subr.bf16.mxu1 %v4940_v25  ;;  %v5030_v25 = vld [vmem:[#allocation5 + $0x7fc] ss:$48 sps:$4 sm:$0xff]  }
  0xce   :  { %2631 = vmatpush1.bf16.msra.mxu0 %v4935_v26  ;;  %v5025_v26 = vld [vmem:[#allocation5 + $0x1f8] ss:$48 sps:$4 sm:$0xff]  }
  0xcf   :  { %2672 = vmatpush1.bf16.msra.mxu1 %v4938_v27  ;;  %2632 = vmatprep.subr.bf16.mxu0 %v4943_v28  ;;  %v5028_v27 = vld [vmem:[#allocation5 + $0x7f8] ss:$48 sps:$4 sm:$0xff]   ;;  %v5033_v28 = vld [vmem:[#allocation5 + $0x19c] ss:$48 sps:$4 sm:$0xff]  }
  0xd0   :  { %2673 = vmatprep.subr.bf16.mxu1 %v4946_v29  ;;  %v5036_v29 = vld [vmem:[#allocation5 + $0x79c] ss:$48 sps:$4 sm:$0xff]  }
  0xd2   :  { %2633 = vmatpush1.bf16.msra.mxu0 %v4941_v30  ;;  %v5031_v30 = vld [vmem:[#allocation5 + $0x198] ss:$48 sps:$4 sm:$0xff]  }
  0xd3   :  { %2674 = vmatpush1.bf16.msra.mxu1 %v4944_v31  ;;  %2634 = vmatprep.subr.bf16.mxu0 %v4949_v32  ;;  %v5034_v31 = vld [vmem:[#allocation5 + $0x798] ss:$48 sps:$4 sm:$0xff]   ;;  %v5039_v32 = vld [vmem:[#allocation5 + $0x13c] ss:$48 sps:$4 sm:$0xff]  }
  0xd4   :  { %2675 = vmatprep.subr.bf16.mxu1 %v4952_v33  ;;  %v5042_v33 = vld [vmem:[#allocation5 + $0x73c] ss:$48 sps:$4 sm:$0xff]  }
  0xd6   :  { %2635 = vmatpush1.bf16.msra.mxu0 %v4947_v34  ;;  %v5037_v34 = vld [vmem:[#allocation5 + $0x138] ss:$48 sps:$4 sm:$0xff]  }
  0xd7   :  { %2676 = vmatpush1.bf16.msra.mxu1 %v4950_v35  ;;  %2636 = vmatprep.subr.bf16.mxu0 %v4955_v36  ;;  %v5040_v35 = vld [vmem:[#allocation5 + $0x738] ss:$48 sps:$4 sm:$0xff]   ;;  %v5045_v36 = vld [vmem:[#allocation5 + $0xdc] ss:$48 sps:$4 sm:$0xff]  }
  0xd8   :  { %2677 = vmatprep.subr.bf16.mxu1 %v4958_v37  ;;  %v5048_v37 = vld [vmem:[#allocation5 + $0x6dc] ss:$48 sps:$4 sm:$0xff]  }
  0xda   :  { %2637 = vmatpush1.bf16.msra.mxu0 %v4953_v38  ;;  %v5043_v38 = vld [vmem:[#allocation5 + $0xd8] ss:$48 sps:$4 sm:$0xff]  }
  0xdb   :  { %2678 = vmatpush1.bf16.msra.mxu1 %v4956_v39  ;;  %2638 = vmatprep.subr.bf16.mxu0 %v4961_v40  ;;  %v5046_v39 = vld [vmem:[#allocation5 + $0x6d8] ss:$48 sps:$4 sm:$0xff]   ;;  %v5051_v40 = vld [vmem:[#allocation5 + $0x7c] ss:$48 sps:$4 sm:$0xff]  }
  0xdc   :  { %2679 = vmatprep.subr.bf16.mxu1 %v4964_v41  ;;  %v5054_v41 = vld [vmem:[#allocation5 + $0x67c] ss:$48 sps:$4 sm:$0xff]  }
  0xde   :  { %2639 = vmatpush1.bf16.msra.mxu0 %v4959_v42  ;;  %v5049_v42 = vld [vmem:[#allocation5 + $0x78] ss:$48 sps:$4 sm:$0xff]  }
  0xdf   :  { %2680 = vmatpush1.bf16.msra.mxu1 %v4962_v43  ;;  %2640 = vmatprep.subr.bf16.mxu0 %v4967_v44  ;;  %v5052_v43 = vld [vmem:[#allocation5 + $0x678] ss:$48 sps:$4 sm:$0xff]   ;;  %v5057_v44 = vld [vmem:[#allocation5 + $0x1c] ss:$48 sps:$4 sm:$0xff]  }
  0xe0   :  { %2681 = vmatprep.subr.bf16.mxu1 %v4970_v45  ;;  %v5060_v45 = vld [vmem:[#allocation5 + $0x61c] ss:$48 sps:$4 sm:$0xff]  }
  0xe2   :  { %2641 = vmatpush2.bf16.msra.mxu0 %v4965_v46  ;;  %v5055_v46 = vld [vmem:[#allocation5 + $0x18] ss:$48 sps:$4 sm:$0xff]  }
  0xe3   :  { %2682 = vmatpush2.bf16.msra.mxu1 %v4968_v47  ;;  %2642 = vmatprep.subr.bf16.mxu0 %v4973_v48  ;;  %v5058_v47 = vld [vmem:[#allocation5 + $0x618] ss:$48 sps:$4 sm:$0xff]   ;;  %v5063_v48 = vld [vmem:[#allocation5 + $0x5bc] ss:$48 sps:$4 sm:$0xff]  }
  0xe4   :  { %2683 = vmatprep.subr.bf16.mxu1 %v4976_v50  ;;  %v5066_v50 = vld [vmem:[#allocation5 + $0xbbc] ss:$48 sps:$4 sm:$0xff]  }
  0xe6   :  { %2643 = vmatpush2.bf16.msra.mxu0 %v4971_v51  ;;  %v5061_v51 = vld [vmem:[#allocation5 + $0x5b8] ss:$48 sps:$4 sm:$0xff]  }
  0xe7   :  { %2684 = vmatpush2.bf16.msra.mxu1 %v4974_v53  ;;  %2644 = vmatprep.subr.bf16.mxu0 %v4979_v54  ;;  %v5064_v53 = vld [vmem:[#allocation5 + $0xbb8] ss:$48 sps:$4 sm:$0xff]   ;;  %v5069_v54 = vld [vmem:[#allocation5 + $0x55c] ss:$48 sps:$4 sm:$0xff]  }
  0xe8   :  { %2685 = vmatprep.subr.bf16.mxu1 %v4982_v55  ;;  %v5072_v55 = vld [vmem:[#allocation5 + $0xb5c] ss:$48 sps:$4 sm:$0xff]  }
  0xea   :  { %2645 = vmatpush2.bf16.msra.mxu0 %v4977_v56  ;;  %v5067_v56 = vld [vmem:[#allocation5 + $0x558] ss:$48 sps:$4 sm:$0xff]  }
  0xeb   :  { %2686 = vmatpush2.bf16.msra.mxu1 %v4980_v57  ;;  %2646 = vmatprep.subr.bf16.mxu0 %v4985_v58  ;;  %v5070_v57 = vld [vmem:[#allocation5 + $0xb58] ss:$48 sps:$4 sm:$0xff]   ;;  %v5075_v58 = vld [vmem:[#allocation5 + $0x4fc] ss:$48 sps:$4 sm:$0xff]  }
  0xec   :  { %2687 = vmatprep.subr.bf16.mxu1 %v4988_v59  ;;  %v5078_v59 = vld [vmem:[#allocation5 + $0xafc] ss:$48 sps:$4 sm:$0xff]  }
  0xee   :  { %2647 = vmatpush2.bf16.msra.mxu0 %v4983_v60  ;;  %v5073_v60 = vld [vmem:[#allocation5 + $0x4f8] ss:$48 sps:$4 sm:$0xff]  }
  0xef   :  { %2688 = vmatpush2.bf16.msra.mxu1 %v4986_v61  ;;  %2648 = vmatprep.subr.bf16.mxu0 %v4991_v62  ;;  %v5076_v61 = vld [vmem:[#allocation5 + $0xaf8] ss:$48 sps:$4 sm:$0xff]   ;;  %v5081_v62 = vld [vmem:[#allocation5 + $0x49c] ss:$48 sps:$4 sm:$0xff]  }
  0xf0   :  { %2689 = vmatprep.subr.bf16.mxu1 %v4994_v63  ;;  %v5084_v63 = vld [vmem:[#allocation5 + $0xa9c] ss:$48 sps:$4 sm:$0xff]  }
  0xf2   :  { %2649 = vmatpush2.bf16.msra.mxu0 %v4989_v0  ;;  %v5079_v0 = vld [vmem:[#allocation5 + $0x498] ss:$48 sps:$4 sm:$0xff]  }
  0xf3   :  { %2690 = vmatpush2.bf16.msra.mxu1 %v4992_v1  ;;  %2650 = vmatprep.subr.bf16.mxu0 %v4997_v2  ;;  %v5082_v1 = vld [vmem:[#allocation5 + $0xa98] ss:$48 sps:$4 sm:$0xff]   ;;  %v5087_v2 = vld [vmem:[#allocation5 + $0x43c] ss:$48 sps:$4 sm:$0xff]  }
  0xf4   :  { %2691 = vmatprep.subr.bf16.mxu1 %v5000_v3  ;;  %v5090_v3 = vld [vmem:[#allocation5 + $0xa3c] ss:$48 sps:$4 sm:$0xff]  }
  0xf6   :  { %2651 = vmatpush2.bf16.msra.mxu0 %v4995_v4  ;;  %v5085_v4 = vld [vmem:[#allocation5 + $0x438] ss:$48 sps:$4 sm:$0xff]  }
  0xf7   :  { %2692 = vmatpush2.bf16.msra.mxu1 %v4998_v5  ;;  %2652 = vmatprep.subr.bf16.mxu0 %v5003_v6  ;;  %v5088_v5 = vld [vmem:[#allocation5 + $0xa38] ss:$48 sps:$4 sm:$0xff]   ;;  %v5093_v6 = vld [vmem:[#allocation5 + $0x3dc] ss:$48 sps:$4 sm:$0xff]  }
  0xf8   :  { %2693 = vmatprep.subr.bf16.mxu1 %v5006_v7  ;;  %v5096_v7 = vld [vmem:[#allocation5 + $0x9dc] ss:$48 sps:$4 sm:$0xff]  }
  0xfa   :  { %2653 = vmatpush2.bf16.msra.mxu0 %v5001_v10  ;;  %v5091_v10 = vld [vmem:[#allocation5 + $0x3d8] ss:$48 sps:$4 sm:$0xff]  }
  0xfb   :  { %2694 = vmatpush2.bf16.msra.mxu1 %v5004_v11  ;;  %2654 = vmatprep.subr.bf16.mxu0 %v5009_v12  ;;  %v5094_v11 = vld [vmem:[#allocation5 + $0x9d8] ss:$48 sps:$4 sm:$0xff]   ;;  %v480_v12 = vlaneseq }
  0xfc   :  { %2695 = vmatprep.subr.bf16.mxu1 %v5012_v13  ;;  %v5099_v13 = vld [vmem:[#allocation5 + $0x37c] ss:$48 sps:$4 sm:$0xff]  }
  0xfe   :  { %2655 = vmatpush2.bf16.msra.mxu0 %v5007_v14  ;;  %v5102_v14 = vld [vmem:[#allocation5 + $0x97c] ss:$48 sps:$4 sm:$0xff]  }
  0xff   :  { %2696 = vmatpush2.bf16.msra.mxu1 %v5010_v15  ;;  %2706 = vmatprep.subr.bf16.mxu0 %v5015_v16  ;;  %v5097_v15 = vld [vmem:[#allocation5 + $0x378] ss:$48 sps:$4 sm:$0xff]  }
 0x100   :  { %2747 = vmatprep.subr.bf16.mxu1 %v5018_v17  ;;  %v5100_v16 = vld [vmem:[#allocation5 + $0x978] ss:$48 sps:$4 sm:$0xff]   ;;  %v5615_v17 = vshrl.u32 %v480_v12, 7 }
 0x101   :  { %2657 = vmatmul.mubr.bf16.vlgmr.msra.gmra.mxu0 %v5598_v8 }
 0x102   :  { %2698 = vmatmul.mubr.bf16.vlgmr.msra.gmra.mxu1 %v5600_v9  ;;  %2707 = vmatpush1.bf16.msra.mxu0 %v5013_v18  ;;  %v5105_v18 = vld [vmem:[#allocation5 + $0x31c] ss:$48 sps:$4 sm:$0xff]  }
 0x103   :  { %2748 = vmatpush1.bf16.msra.mxu1 %v5016_v19  ;;  %2708 = vmatprep.subr.bf16.mxu0 %v5021_v20  ;;  %v5108_v19 = vld [vmem:[#allocation5 + $0x91c] ss:$48 sps:$4 sm:$0xff]   ;;  %v5103_v20 = vld [vmem:[#allocation5 + $0x318] ss:$48 sps:$4 sm:$0xff]  }
 0x104   :  { %2749 = vmatprep.subr.bf16.mxu1 %v5024_v21  ;;  %2738 = vmatprep.mubr.bf16.mxu0 %v5592_v49  ;;  %v5106_v21 = vld [vmem:[#allocation5 + $0x918] ss:$48 sps:$4 sm:$0xff]  }
 0x105   :  { %2779 = vmatprep.mubr.bf16.mxu1 %v5594_v52 }
 0x106   :  { %2709 = vmatpush1.bf16.msra.mxu0 %v5019_v22  ;;  %v5617_v22 = vld [vmem:[#allocation7] sm:$0xff] }
 0x107   :  { %2750 = vmatpush1.bf16.msra.mxu1 %v5022_v23  ;;  %2710 = vmatprep.subr.bf16.mxu0 %v5027_v24  ;;  %v482_v23 = vsub.s32 0, %v5615_v17  ;;  %v5111_v24 = vld [vmem:[#allocation5 + $0x2c4] ss:$48 sps:$4 sm:$0xff]  }
 0x108   :  { %2751 = vmatprep.subr.bf16.mxu1 %v5030_v25  ;;  %v5114_v25 = vld [vmem:[#allocation5 + $0x8c4] ss:$48 sps:$4 sm:$0xff]  }
 0x10a   :  { %2711 = vmatpush1.bf16.msra.mxu0 %v5025_v26  ;;  %v486_v26 = vsub.s32 1, %v5615_v17 }
 0x10b   :  { %2752 = vmatpush1.bf16.msra.mxu1 %v5028_v27  ;;  %2712 = vmatprep.subr.bf16.mxu0 %v5033_v28  ;;  %v5109_v27 = vld [vmem:[#allocation5 + $0x2c0] ss:$48 sps:$4 sm:$0xff]   ;;  %v483_v28 = vrot.slane %v5617_v22, %v482_v23 }
 0x10c   :  { %2753 = vmatprep.subr.bf16.mxu1 %v5036_v29  ;;  %v5112_v29 = vld [vmem:[#allocation5 + $0x8c0] ss:$48 sps:$4 sm:$0xff]  }
 0x10e   :  { %2713 = vmatpush1.bf16.msra.mxu0 %v5031_v30  ;;  %v5117_v30 = vld [vmem:[#allocation5 + $0x264] ss:$48 sps:$4 sm:$0xff]  }
 0x10f   :  { %2754 = vmatpush1.bf16.msra.mxu1 %v5034_v31  ;;  %2714 = vmatprep.subr.bf16.mxu0 %v5039_v32  ;;  %v5120_v31 = vld [vmem:[#allocation5 + $0x864] ss:$48 sps:$4 sm:$0xff]   ;;  %v487_v32 = vrot.slane %v5617_v22, %v486_v26 }
 0x110   :  { %2755 = vmatprep.subr.bf16.mxu1 %v5042_v33  ;;  %v5115_v33 = vld [vmem:[#allocation5 + $0x260] ss:$48 sps:$4 sm:$0xff]  }
 0x112   :  { %2715 = vmatpush1.bf16.msra.mxu0 %v5037_v34 }
 0x113   :  { %2756 = vmatpush1.bf16.msra.mxu1 %v5040_v35  ;;  %2716 = vmatprep.subr.bf16.mxu0 %v5045_v36  ;;  %v5118_v36 = vld [vmem:[#allocation5 + $0x860] ss:$48 sps:$4 sm:$0xff]  }
 0x114   :  { %2757 = vmatprep.subr.bf16.mxu1 %v5048_v37 }
 0x116   :  { %2717 = vmatpush1.bf16.msra.mxu0 %v5043_v38  ;;  %v5123_v38 = vld [vmem:[#allocation5 + $0x204] ss:$48 sps:$4 sm:$0xff]  }
 0x117   :  { %2758 = vmatpush1.bf16.msra.mxu1 %v5046_v39  ;;  %2718 = vmatprep.subr.bf16.mxu0 %v5051_v40 }
 0x118   :  { %2759 = vmatprep.subr.bf16.mxu1 %v5054_v41  ;;  %v5126_v41 = vld [vmem:[#allocation5 + $0x804] ss:$48 sps:$4 sm:$0xff]  }
 0x11a   :  { %2719 = vmatpush1.bf16.msra.mxu0 %v5049_v42 }
 0x11b   :  { %2760 = vmatpush1.bf16.msra.mxu1 %v5052_v43  ;;  %2720 = vmatprep.subr.bf16.mxu0 %v5057_v44  ;;  %v5121_v44 = vld [vmem:[#allocation5 + $0x200] ss:$48 sps:$4 sm:$0xff]  }
 0x11c   :  { %2761 = vmatprep.subr.bf16.mxu1 %v5060_v45 }
 0x11e   :  { %2721 = vmatpush1.bf16.msra.mxu0 %v5055_v46 }
 0x11f   :  { %2762 = vmatpush1.bf16.msra.mxu1 %v5058_v47  ;;  %2722 = vmatprep.subr.bf16.mxu0 %v5063_v48  ;;  %v5124_v47 = vld [vmem:[#allocation5 + $0x800] ss:$48 sps:$4 sm:$0xff]  }
 0x120   :  { %2763 = vmatprep.subr.bf16.mxu1 %v5066_v50  ;;  %v5129_v50 = vld [vmem:[#allocation5 + $0x1a4] ss:$48 sps:$4 sm:$0xff]  }
 0x122   :  { %2723 = vmatpush2.bf16.msra.mxu0 %v5061_v51 }
 0x123   :  { %2764 = vmatpush2.bf16.msra.mxu1 %v5064_v53  ;;  %2724 = vmatprep.subr.bf16.mxu0 %v5069_v54  ;;  %v5132_v54 = vld [vmem:[#allocation5 + $0x7a4] ss:$48 sps:$4 sm:$0xff]  }
 0x124   :  { %2765 = vmatprep.subr.bf16.mxu1 %v5072_v55  ;;  %v5127_v55 = vld [vmem:[#allocation5 + $0x1a0] ss:$48 sps:$4 sm:$0xff]  }
 0x126   :  { %2725 = vmatpush2.bf16.msra.mxu0 %v5067_v56  ;;  %v5130_v56 = vld [vmem:[#allocation5 + $0x7a0] ss:$48 sps:$4 sm:$0xff]  }
 0x127   :  { %2766 = vmatpush2.bf16.msra.mxu1 %v5070_v57  ;;  %2726 = vmatprep.subr.bf16.mxu0 %v5075_v58  ;;  %v5135_v57 = vld [vmem:[#allocation5 + $0x144] ss:$48 sps:$4 sm:$0xff]  }
 0x128   :  { %2767 = vmatprep.subr.bf16.mxu1 %v5078_v59  ;;  %v5138_v58 = vld [vmem:[#allocation5 + $0x744] ss:$48 sps:$4 sm:$0xff]   ;;  %v5133_v59 = vld [vmem:[#allocation5 + $0x140] ss:$48 sps:$4 sm:$0xff]  }
 0x12a   :  { %2727 = vmatpush2.bf16.msra.mxu0 %v5073_v60  ;;  %v5136_v60 = vld [vmem:[#allocation5 + $0x740] ss:$48 sps:$4 sm:$0xff]  }
 0x12b   :  { %2768 = vmatpush2.bf16.msra.mxu1 %v5076_v61  ;;  %2728 = vmatprep.subr.bf16.mxu0 %v5081_v62  ;;  %v5141_v61 = vld [vmem:[#allocation5 + $0xe4] ss:$48 sps:$4 sm:$0xff]  }
 0x12c   :  { %2769 = vmatprep.subr.bf16.mxu1 %v5084_v63  ;;  %v5144_v62 = vld [vmem:[#allocation5 + $0x6e4] ss:$48 sps:$4 sm:$0xff]   ;;  %v5139_v63 = vld [vmem:[#allocation5 + $0xe0] ss:$48 sps:$4 sm:$0xff]  }
 0x12e   :  { %2729 = vmatpush2.bf16.msra.mxu0 %v5079_v0  ;;  %v5142_v0 = vld [vmem:[#allocation5 + $0x6e0] ss:$48 sps:$4 sm:$0xff]  }
 0x12f   :  { %2770 = vmatpush2.bf16.msra.mxu1 %v5082_v1  ;;  %2730 = vmatprep.subr.bf16.mxu0 %v5087_v2  ;;  %v5147_v1 = vld [vmem:[#allocation5 + $0x84] ss:$48 sps:$4 sm:$0xff]  }
 0x130   :  { %2771 = vmatprep.subr.bf16.mxu1 %v5090_v3  ;;  %v5150_v2 = vld [vmem:[#allocation5 + $0x684] ss:$48 sps:$4 sm:$0xff]   ;;  %v5145_v3 = vld [vmem:[#allocation5 + $0x80] ss:$48 sps:$4 sm:$0xff]  }
 0x132   :  { %2731 = vmatpush2.bf16.msra.mxu0 %v5085_v4  ;;  %v5148_v4 = vld [vmem:[#allocation5 + $0x680] ss:$48 sps:$4 sm:$0xff]  }
 0x133   :  { %2772 = vmatpush2.bf16.msra.mxu1 %v5088_v5  ;;  %2732 = vmatprep.subr.bf16.mxu0 %v5093_v6  ;;  %v5153_v5 = vld [vmem:[#allocation5 + $0x24] ss:$48 sps:$4 sm:$0xff]  }
 0x134   :  { %2773 = vmatprep.subr.bf16.mxu1 %v5096_v7  ;;  %v5156_v6 = vld [vmem:[#allocation5 + $0x624] ss:$48 sps:$4 sm:$0xff]   ;;  %v5151_v7 = vld [vmem:[#allocation5 + $0x20] ss:$48 sps:$4 sm:$0xff]  }
 0x136   :  { %2733 = vmatpush2.bf16.msra.mxu0 %v5091_v10  ;;  %v490_v10 = vsub.s32 2, %v5615_v17 }
 0x137   :  { %2774 = vmatpush2.bf16.msra.mxu1 %v5094_v11  ;;  %2734 = vmatprep.subr.bf16.mxu0 %v5099_v13  ;;  %v5154_v11 = vld [vmem:[#allocation5 + $0x620] ss:$48 sps:$4 sm:$0xff]   ;;  %v5159_v13 = vld [vmem:[#allocation5 + $0x5c4] ss:$48 sps:$4 sm:$0xff]  }
 0x138   :  { %2775 = vmatprep.subr.bf16.mxu1 %v5102_v14  ;;  %v5162_v14 = vld [vmem:[#allocation5 + $0xbc4] ss:$48 sps:$4 sm:$0xff]  }
 0x13a   :  { %2735 = vmatpush2.bf16.msra.mxu0 %v5097_v15  ;;  %v5157_v15 = vld [vmem:[#allocation5 + $0x5c0] ss:$48 sps:$4 sm:$0xff]  }
 0x13b   :  { %2776 = vmatpush2.bf16.msra.mxu1 %v5100_v16  ;;  %2736 = vmatprep.subr.bf16.mxu0 %v5105_v18  ;;  %v5160_v16 = vld [vmem:[#allocation5 + $0xbc0] ss:$48 sps:$4 sm:$0xff]   ;;  %v5165_v18 = vld [vmem:[#allocation5 + $0x564] ss:$48 sps:$4 sm:$0xff]  }
 0x13c   :  { %2777 = vmatprep.subr.bf16.mxu1 %v5108_v19  ;;  %v5168_v19 = vld [vmem:[#allocation5 + $0xb64] ss:$48 sps:$4 sm:$0xff]  }
 0x13e   :  { %2737 = vmatpush2.bf16.msra.mxu0 %v5103_v20  ;;  %v5163_v20 = vld [vmem:[#allocation5 + $0x560] ss:$48 sps:$4 sm:$0xff]  }
 0x13f   :  { %2778 = vmatpush2.bf16.msra.mxu1 %v5106_v21  ;;  %2788 = vmatprep.subr.bf16.mxu0 %v5111_v24  ;;  %v5166_v21 = vld [vmem:[#allocation5 + $0xb60] ss:$48 sps:$4 sm:$0xff]   ;;  %v5171_v24 = vld [vmem:[#allocation5 + $0x504] ss:$48 sps:$4 sm:$0xff]  }
 0x140   :  { %2829 = vmatprep.subr.bf16.mxu1 %v5114_v25  ;;  %v5174_v25 = vld [vmem:[#allocation5 + $0xb04] ss:$48 sps:$4 sm:$0xff]  }
 0x141   :  { %v2494_v34 = vpop.f32.mrf.mxu0  ;;  %2739 = vmatmul.mubr.bf16.vlgmr.msra.gmra.mxu0 %v5598_v8 }
 0x142   :  { %v2535_v35 = vpop.f32.mrf.mxu1  ;;  %2780 = vmatmul.mubr.bf16.vlgmr.msra.gmra.mxu1 %v5600_v9  ;;  %v2495_v37 = vadd.f32 %v2494_v34, %v483_v28  ;;  %2789 = vmatpush1.bf16.msra.mxu0 %v5109_v27  ;;  %v5169_v27 = vld [vmem:[#allocation5 + $0x500] ss:$48 sps:$4 sm:$0xff]   ;;  %v5186_v34 = vld [vmem:[#allocation5 + $0xa44] ss:$48 sps:$4 sm:$0xff]  }
 0x143   :  { %2830 = vmatpush1.bf16.msra.mxu1 %v5112_v29  ;;  %v2496_v39 = vpop.f32.mrf.mxu0  ;;  %2790 = vmatprep.subr.bf16.mxu0 %v5117_v30  ;;  %v5172_v28 = vld [vmem:[#allocation5 + $0xb00] ss:$48 sps:$4 sm:$0xff]   ;;  %v5177_v29 = vld [vmem:[#allocation5 + $0x4a4] ss:$48 sps:$4 sm:$0xff]  }
 0x144   :  { %v2537_v40 = vpop.f32.mrf.mxu1  ;;  %2831 = vmatprep.subr.bf16.mxu1 %v5120_v31  ;;  %v5629_v42 = vadd.f32 %v2535_v35, %v2495_v37  ;;  %v2497_v43 = vadd.f32 %v2496_v39, %v487_v32  ;;  %2820 = vmatprep.mubr.bf16.mxu0 %v5592_v49  ;;  %v5180_v30 = vld [vmem:[#allocation5 + $0xaa4] ss:$48 sps:$4 sm:$0xff]   ;;  %v5175_v31 = vld [vmem:[#allocation5 + $0x4a0] ss:$48 sps:$4 sm:$0xff]  }
 0x145   :  { %2861 = vmatprep.mubr.bf16.mxu1 %v5594_v52  ;;  %v2498_v45 = vpop.f32.mrf.mxu0  ;;  %v5178_v32 = vld [vmem:[#allocation5 + $0xaa0] ss:$48 sps:$4 sm:$0xff]   ;;  %v5189_v37 = vld [vmem:[#allocation5 + $0x3e4] ss:$48 sps:$4 sm:$0xff]  }
 0x146   :  { %v2539_v46 = vpop.f32.mrf.mxu1  ;;  %v5633_v48 = vadd.f32 %v2537_v40, %v2497_v43  ;;  %2791 = vmatpush1.bf16.msra.mxu0 %v5115_v33  ;;  %v5183_v33 = vld [vmem:[#allocation5 + $0x444] ss:$48 sps:$4 sm:$0xff]   ;;  %v5181_v35 = vld [vmem:[#allocation5 + $0x440] ss:$48 sps:$4 sm:$0xff]  }
 0x147   :  { %2832 = vmatpush1.bf16.msra.mxu1 %v5118_v36  ;;  %v2499_v51 = vpop.f32.mrf.mxu0  ;;  %2792 = vmatprep.subr.bf16.mxu0 %v5123_v38  ;;  %v5184_v36 = vld [vmem:[#allocation5 + $0xa40] ss:$48 sps:$4 sm:$0xff]   ;;  %v5192_v38 = vld [vmem:[#allocation5 + $0x9e4] ss:$48 sps:$4 sm:$0xff]  }
 0x148   :  { %v2540_v53 = vpop.f32.mrf.mxu1  ;;  %2833 = vmatprep.subr.bf16.mxu1 %v5126_v41  ;;  %v5187_v39 = vld [vmem:[#allocation5 + $0x3e0] ss:$48 sps:$4 sm:$0xff]   ;;  %v5195_v41 = vld [vmem:[#allocation5 + $0x384] ss:$48 sps:$4 sm:$0xff]  }
 0x149   :  { %v5190_v40 = vld [vmem:[#allocation5 + $0x9e0] ss:$48 sps:$4 sm:$0xff]   ;;  %v5198_v43 = vld [vmem:[#allocation5 + $0x984] ss:$48 sps:$4 sm:$0xff]   ;;  %v5207_v53 = vld [vmem:[#allocation5 + $0x2cc] ss:$48 sps:$4 sm:$0xff]  }
 0x14a   :  { %2793 = vmatpush1.bf16.msra.mxu0 %v5121_v44  ;;  %v5193_v44 = vld [vmem:[#allocation5 + $0x380] ss:$48 sps:$4 sm:$0xff]   ;;  %v5201_v46 = vld [vmem:[#allocation5 + $0x324] ss:$48 sps:$4 sm:$0xff]  }
 0x14b   :  { %2834 = vmatpush1.bf16.msra.mxu1 %v5124_v47  ;;  %2794 = vmatprep.subr.bf16.mxu0 %v5129_v50  ;;  %v5196_v45 = vld [vmem:[#allocation5 + $0x980] ss:$48 sps:$4 sm:$0xff]   ;;  %v5204_v47 = vld [vmem:[#allocation5 + $0x924] ss:$48 sps:$4 sm:$0xff]  }
 0x14c   :  { %2835 = vmatprep.subr.bf16.mxu1 %v5132_v54  ;;  %v5199_v50 = vld [vmem:[#allocation5 + $0x320] ss:$48 sps:$4 sm:$0xff]   ;;  %v5210_v54 = vld [vmem:[#allocation5 + $0x8cc] ss:$48 sps:$4 sm:$0xff]  }
 0x14d   :  { %v5202_v51 = vld [vmem:[#allocation5 + $0x920] ss:$48 sps:$4 sm:$0xff]  }
 0x14e   :  { %2795 = vmatpush1.bf16.msra.mxu0 %v5127_v55  ;;  %v5205_v55 = vld [vmem:[#allocation5 + $0x2c8] ss:$48 sps:$4 sm:$0xff]  }
 0x14f   :  { %2836 = vmatpush1.bf16.msra.mxu1 %v5130_v56  ;;  %2796 = vmatprep.subr.bf16.mxu0 %v5135_v57  ;;  %v5208_v56 = vld [vmem:[#allocation5 + $0x8c8] ss:$48 sps:$4 sm:$0xff]   ;;  %v5213_v57 = vld [vmem:[#allocation5 + $0x26c] ss:$48 sps:$4 sm:$0xff]  }
 0x150   :  { %2837 = vmatprep.subr.bf16.mxu1 %v5138_v58  ;;  %v491_v58 = vrot.slane %v5617_v22, %v490_v10 }
 0x152   :  { %2797 = vmatpush1.bf16.msra.mxu0 %v5133_v59  ;;  %v5216_v59 = vld [vmem:[#allocation5 + $0x86c] ss:$48 sps:$4 sm:$0xff]  }
 0x153   :  { %2838 = vmatpush1.bf16.msra.mxu1 %v5136_v60  ;;  %2798 = vmatprep.subr.bf16.mxu0 %v5141_v61  ;;  %v5211_v60 = vld [vmem:[#allocation5 + $0x268] ss:$48 sps:$4 sm:$0xff]  }
 0x154   :  { %2839 = vmatprep.subr.bf16.mxu1 %v5144_v62  ;;  %v5214_v61 = vld [vmem:[#allocation5 + $0x868] ss:$48 sps:$4 sm:$0xff]  }
 0x156   :  { %2799 = vmatpush1.bf16.msra.mxu0 %v5139_v63 }
 0x157   :  { %2840 = vmatpush1.bf16.msra.mxu1 %v5142_v0  ;;  %2800 = vmatprep.subr.bf16.mxu0 %v5147_v1  ;;  %v5219_v0 = vld [vmem:[#allocation5 + $0x20c] ss:$48 sps:$4 sm:$0xff]  }
 0x158   :  { %2841 = vmatprep.subr.bf16.mxu1 %v5150_v2  ;;  %v5222_v1 = vld [vmem:[#allocation5 + $0x80c] ss:$48 sps:$4 sm:$0xff]  }
 0x15a   :  { %2801 = vmatpush1.bf16.msra.mxu0 %v5145_v3 }
 0x15b   :  { %2842 = vmatpush1.bf16.msra.mxu1 %v5148_v4  ;;  %2802 = vmatprep.subr.bf16.mxu0 %v5153_v5 }
 0x15c   :  { %2843 = vmatprep.subr.bf16.mxu1 %v5156_v6  ;;  %v5217_v6 = vld [vmem:[#allocation5 + $0x208] ss:$48 sps:$4 sm:$0xff]  }
 0x15e   :  { %2803 = vmatpush1.bf16.msra.mxu0 %v5151_v7  ;;  %v5220_v7 = vld [vmem:[#allocation5 + $0x808] ss:$48 sps:$4 sm:$0xff]  }
 0x15f   :  { %2844 = vmatpush1.bf16.msra.mxu1 %v5154_v11  ;;  %2804 = vmatprep.subr.bf16.mxu0 %v5159_v13 }
 0x160   :  { %2845 = vmatprep.subr.bf16.mxu1 %v5162_v14  ;;  %v5225_v14 = vld [vmem:[#allocation5 + $0x1ac] ss:$48 sps:$4 sm:$0xff]  }
 0x162   :  { %2805 = vmatpush2.bf16.msra.mxu0 %v5157_v15  ;;  %v5228_v15 = vld [vmem:[#allocation5 + $0x7ac] ss:$48 sps:$4 sm:$0xff]  }
 0x163   :  { %2846 = vmatpush2.bf16.msra.mxu1 %v5160_v16  ;;  %2806 = vmatprep.subr.bf16.mxu0 %v5165_v18 }
 0x164   :  { %2847 = vmatprep.subr.bf16.mxu1 %v5168_v19  ;;  %v5223_v19 = vld [vmem:[#allocation5 + $0x1a8] ss:$48 sps:$4 sm:$0xff]  }
 0x166   :  { %2807 = vmatpush2.bf16.msra.mxu0 %v5163_v20  ;;  %v5226_v20 = vld [vmem:[#allocation5 + $0x7a8] ss:$48 sps:$4 sm:$0xff]  }
 0x167   :  { %2848 = vmatpush2.bf16.msra.mxu1 %v5166_v21  ;;  %2808 = vmatprep.subr.bf16.mxu0 %v5171_v24  ;;  %v5231_v21 = vld [vmem:[#allocation5 + $0x14c] ss:$48 sps:$4 sm:$0xff]  }
 0x168   :  { %2849 = vmatprep.subr.bf16.mxu1 %v5174_v25  ;;  %v5234_v24 = vld [vmem:[#allocation5 + $0x74c] ss:$48 sps:$4 sm:$0xff]  }
 0x169   :  { %v5237_v25 = vld [vmem:[#allocation5 + $0xec] ss:$48 sps:$4 sm:$0xff]  }
 0x16a   :  { %2809 = vmatpush2.bf16.msra.mxu0 %v5169_v27  ;;  %v5240_v27 = vld [vmem:[#allocation5 + $0x6ec] ss:$48 sps:$4 sm:$0xff]  }
 0x16b   :  { %2850 = vmatpush2.bf16.msra.mxu1 %v5172_v28  ;;  %2810 = vmatprep.subr.bf16.mxu0 %v5177_v29  ;;  %v5235_v28 = vld [vmem:[#allocation5 + $0xe8] ss:$48 sps:$4 sm:$0xff]  }
 0x16c   :  { %2851 = vmatprep.subr.bf16.mxu1 %v5180_v30  ;;  %v5238_v29 = vld [vmem:[#allocation5 + $0x6e8] ss:$48 sps:$4 sm:$0xff]   ;;  %v5243_v30 = vld [vmem:[#allocation5 + $0x8c] ss:$48 sps:$4 sm:$0xff]  }
 0x16e   :  { %2811 = vmatpush2.bf16.msra.mxu0 %v5175_v31  ;;  %v5246_v31 = vld [vmem:[#allocation5 + $0x68c] ss:$48 sps:$4 sm:$0xff]  }
 0x16f   :  { %2852 = vmatpush2.bf16.msra.mxu1 %v5178_v32  ;;  %2812 = vmatprep.subr.bf16.mxu0 %v5183_v33  ;;  %v5241_v32 = vld [vmem:[#allocation5 + $0x88] ss:$48 sps:$4 sm:$0xff]  }
 0x170   :  { %2853 = vmatprep.subr.bf16.mxu1 %v5186_v34  ;;  %v5244_v33 = vld [vmem:[#allocation5 + $0x688] ss:$48 sps:$4 sm:$0xff]   ;;  %v5249_v34 = vld [vmem:[#allocation5 + $0x2c] ss:$48 sps:$4 sm:$0xff]  }
 0x172   :  { %2813 = vmatpush2.bf16.msra.mxu0 %v5181_v35  ;;  %v5252_v35 = vld [vmem:[#allocation5 + $0x62c] ss:$48 sps:$4 sm:$0xff]  }
 0x173   :  { %2854 = vmatpush2.bf16.msra.mxu1 %v5184_v36  ;;  %2814 = vmatprep.subr.bf16.mxu0 %v5189_v37  ;;  %v5247_v36 = vld [vmem:[#allocation5 + $0x28] ss:$48 sps:$4 sm:$0xff]  }
 0x174   :  { %2855 = vmatprep.subr.bf16.mxu1 %v5192_v38  ;;  %v5250_v37 = vld [vmem:[#allocation5 + $0x628] ss:$48 sps:$4 sm:$0xff]   ;;  %v5255_v38 = vld [vmem:[#allocation5 + $0x5cc] ss:$48 sps:$4 sm:$0xff]  }
 0x176   :  { %2815 = vmatpush2.bf16.msra.mxu0 %v5187_v39  ;;  %v5258_v39 = vld [vmem:[#allocation5 + $0xbcc] ss:$48 sps:$4 sm:$0xff]  }
 0x177   :  { %2856 = vmatpush2.bf16.msra.mxu1 %v5190_v40  ;;  %2816 = vmatprep.subr.bf16.mxu0 %v5195_v41  ;;  %v5253_v40 = vld [vmem:[#allocation5 + $0x5c8] ss:$48 sps:$4 sm:$0xff]  }
 0x178   :  { %2857 = vmatprep.subr.bf16.mxu1 %v5198_v43  ;;  %v5256_v41 = vld [vmem:[#allocation5 + $0xbc8] ss:$48 sps:$4 sm:$0xff]   ;;  %v5261_v43 = vld [vmem:[#allocation5 + $0x56c] ss:$48 sps:$4 sm:$0xff]  }
 0x17a   :  { %2817 = vmatpush2.bf16.msra.mxu0 %v5193_v44  ;;  %v5264_v44 = vld [vmem:[#allocation5 + $0xb6c] ss:$48 sps:$4 sm:$0xff]  }
 0x17b   :  { %2858 = vmatpush2.bf16.msra.mxu1 %v5196_v45  ;;  %2818 = vmatprep.subr.bf16.mxu0 %v5201_v46  ;;  %v5259_v45 = vld [vmem:[#allocation5 + $0x568] ss:$48 sps:$4 sm:$0xff]  }
 0x17c   :  { %2859 = vmatprep.subr.bf16.mxu1 %v5204_v47  ;;  %v5262_v46 = vld [vmem:[#allocation5 + $0xb68] ss:$48 sps:$4 sm:$0xff]   ;;  %v5267_v47 = vld [vmem:[#allocation5 + $0x50c] ss:$48 sps:$4 sm:$0xff]  }
 0x17e   :  { %2819 = vmatpush2.bf16.msra.mxu0 %v5199_v50  ;;  %v5270_v50 = vld [vmem:[#allocation5 + $0xb0c] ss:$48 sps:$4 sm:$0xff]  }
 0x17f   :  { %2860 = vmatpush2.bf16.msra.mxu1 %v5202_v51  ;;  %2870 = vmatprep.subr.bf16.mxu0 %v5207_v53  ;;  %v5265_v51 = vld [vmem:[#allocation5 + $0x508] ss:$48 sps:$4 sm:$0xff]  }
 0x180   :  { %2911 = vmatprep.subr.bf16.mxu1 %v5210_v54  ;;  %v5268_v53 = vld [vmem:[#allocation5 + $0xb08] ss:$48 sps:$4 sm:$0xff]   ;;  %v5273_v54 = vld [vmem:[#allocation5 + $0x4ac] ss:$48 sps:$4 sm:$0xff]  }
 0x181   :  { %v2576_v62 = vpop.f32.mrf.mxu0  ;;  %2821 = vmatmul.mubr.bf16.vlgmr.msra.gmra.mxu0 %v5598_v8 }
 0x182   :  { %v2617_v63 = vpop.f32.mrf.mxu1  ;;  %2862 = vmatmul.mubr.bf16.vlgmr.msra.gmra.mxu1 %v5600_v9  ;;  %v2577_v2 = vadd.f32 %v2576_v62, %v491_v58  ;;  %2871 = vmatpush1.bf16.msra.mxu0 %v5205_v55  ;;  %v5276_v55 = vld [vmem:[#allocation5 + $0xaac] ss:$48 sps:$4 sm:$0xff]   ;;  %v5280_v62 = vld [vmem:[#allocation5 + $0xa48] ss:$48 sps:$4 sm:$0xff]  }
 0x183   :  { %2912 = vmatpush1.bf16.msra.mxu1 %v5208_v56  ;;  %v5641_v3 = vpop.f32.mrf.mxu0  ;;  %2872 = vmatprep.subr.bf16.mxu0 %v5213_v57  ;;  %v5271_v56 = vld [vmem:[#allocation5 + $0x4a8] ss:$48 sps:$4 sm:$0xff]   ;;  %v5279_v58 = vld [vmem:[#allocation5 + $0x44c] ss:$48 sps:$4 sm:$0xff]  }
 0x184   :  { %v5643_v4 = vpop.f32.mrf.mxu1  ;;  %2913 = vmatprep.subr.bf16.mxu1 %v5216_v59  ;;  %v5645_v5 = vadd.f32 %v2617_v63, %v2577_v2  ;;  %2902 = vmatprep.mubr.bf16.mxu0 %v5592_v49  ;;  %v5229_v49 = vld [vmem:[#allocation5 + $0x148] ss:$48 sps:$4 sm:$0xff]   ;;  %v5282_v59 = vld [vmem:[#allocation5 + $0xa4c] ss:$48 sps:$4 sm:$0xff]  }
 0x185   :  { %2943 = vmatprep.mubr.bf16.mxu1 %v5594_v52  ;;  %v2580_v11 = vpop.f32.mrf.mxu0  ;;  %v5232_v52 = vld [vmem:[#allocation5 + $0x748] ss:$48 sps:$4 sm:$0xff]   ;;  %v5285_v63 = vld [vmem:[#allocation5 + $0x3ec] ss:$48 sps:$4 sm:$0xff]  }
 0x186   :  { %v2621_v13 = vpop.f32.mrf.mxu1  ;;  %2873 = vmatpush1.bf16.msra.mxu0 %v5211_v60  ;;  %v5274_v57 = vld [vmem:[#allocation5 + $0xaa8] ss:$48 sps:$4 sm:$0xff]   ;;  %v494_v60 = vsub.s32 3, %v5615_v17  ;;  %v5294_v11 = vld [vmem:[#allocation5 + $0x98c] ss:$48 sps:$4 sm:$0xff]  }
 0x187   :  { %2914 = vmatpush1.bf16.msra.mxu1 %v5214_v61  ;;  %v2581_v16 = vpop.f32.mrf.mxu0  ;;  %2874 = vmatprep.subr.bf16.mxu0 %v5219_v0  ;;  %v5277_v61 = vld [vmem:[#allocation5 + $0x448] ss:$48 sps:$4 sm:$0xff]   ;;  %v5288_v0 = vld [vmem:[#allocation5 + $0x9ec] ss:$48 sps:$4 sm:$0xff]  }
 0x188   :  { %v2622_v18 = vpop.f32.mrf.mxu1  ;;  %2915 = vmatprep.subr.bf16.mxu1 %v5222_v1  ;;  %v495_v1 = vrot.slane %v5617_v22, %v494_v60  ;;  %v5283_v2 = vld [vmem:[#allocation5 + $0x3e8] ss:$48 sps:$4 sm:$0xff]   ;;  %v5297_v16 = vld [vmem:[#allocation5 + $0x32c] ss:$48 sps:$4 sm:$0xff]  }
 0x189   :  { %v5300_v18 = vld [vmem:[#allocation5 + $0x92c] ss:$48 sps:$4 sm:$0xff]  }
 0x18a   :  { %2875 = vmatpush1.bf16.msra.mxu0 %v5217_v6  ;;  %v5286_v6 = vld [vmem:[#allocation5 + $0x9e8] ss:$48 sps:$4 sm:$0xff]   ;;  %v2579_v13 = vadd.f32 %v5641_v3, %v495_v1  ;;  %v2953_v3 = vmax.f32 %v5633_v48, 0.0  ;;  %v5307_v48 = vld [vmem:[#allocation8 + $0x30] sm:$0xff]  }
 0x18b   :  { %2916 = vmatpush1.bf16.msra.mxu1 %v5220_v7  ;;  %2876 = vmatprep.subr.bf16.mxu0 %v5225_v14  ;;  %v5291_v7 = vld [vmem:[#allocation5 + $0x38c] ss:$48 sps:$4 sm:$0xff]   ;;  %v5289_v14 = vld [vmem:[#allocation5 + $0x388] ss:$48 sps:$4 sm:$0xff]  }
 0x18c   :  { %2917 = vmatprep.subr.bf16.mxu1 %v5228_v15  ;;  %v5292_v15 = vld [vmem:[#allocation5 + $0x988] ss:$48 sps:$4 sm:$0xff]   ;;  %v2620_v22 = vadd.f32 %v5643_v4, %v2579_v13  ;;  %v5306_v4 = vld [vmem:[#allocation8 + $0xf0] sm:$0xff]   ;;  %v2952_v13 = vmax.f32 %v5629_v42, 0.0 }
 0x18d   :  { %v5328_v1 = vld [vmem:[#allocation8 + $0x88] sm:$0xff]   ;;  %v5344_v42 = vld [vmem:[#allocation8 + $0x1f0] sm:$0xff]  }
 0x18e   :  { %2877 = vmatpush1.bf16.msra.mxu0 %v5223_v19  ;;  %v5295_v19 = vld [vmem:[#allocation5 + $0x328] ss:$48 sps:$4 sm:$0xff]  }
 0x18f   :  { %2918 = vmatpush1.bf16.msra.mxu1 %v5226_v20  ;;  %2878 = vmatprep.subr.bf16.mxu0 %v5231_v21  ;;  %v5298_v20 = vld [vmem:[#allocation5 + $0x928] ss:$48 sps:$4 sm:$0xff]  }
 0x190   :  { %2919 = vmatprep.subr.bf16.mxu1 %v5234_v24  ;;  %v5301_v21 = vld [vmem:[#allocation8 + $0x78] sm:$0xff]  }
 0x191   :  { %v5302_v24 = vld [vmem:[#allocation8 + $0xf8] sm:$0xff]  }
 0x192   :  { %2879 = vmatpush1.bf16.msra.mxu0 %v5229_v49  ;;  %v2955_v49 = vmax.f32 %v2620_v22, 0.0 }
 0x193   :  { %2920 = vmatpush1.bf16.msra.mxu1 %v5232_v52  ;;  %2880 = vmatprep.subr.bf16.mxu0 %v5237_v25  ;;  %v5303_v52 = vld [vmem:[#allocation8 + $0x38] sm:$0xff]  }
 0x194   :  { %2921 = vmatprep.subr.bf16.mxu1 %v5240_v27  ;;  %v5304_v25 = vld [vmem:[#allocation8 + $0xb8] sm:$0xff]   ;;  %v2965_v27 = vpack.c.bf16 %v2953_v3, %v2953_v3 }
 0x195   :  { %v5342_v3 = vld [vmem:[#allocation8 + $0x1b8] sm:$0xff]  }
 0x196   :  { %2881 = vmatpush1.bf16.msra.mxu0 %v5235_v28  ;;  %v5305_v28 = vld [vmem:[#allocation8 + $0x70] sm:$0xff]  }
 0x197   :  { %2922 = vmatpush1.bf16.msra.mxu1 %v5238_v29  ;;  %2882 = vmatprep.subr.bf16.mxu0 %v5243_v30  ;;  %v2967_v29 = vpack.c.bf16 %v2955_v49, %v2955_v49 }
 0x198   :  { %2923 = vmatprep.subr.bf16.mxu1 %v5246_v31 }
 0x19a   :  { %2883 = vmatpush1.bf16.msra.mxu0 %v5241_v32 }
 0x19b   :  { %2924 = vmatpush1.bf16.msra.mxu1 %v5244_v33  ;;  %2884 = vmatprep.subr.bf16.mxu0 %v5249_v34  ;;  %v5308_v34 = vld [vmem:[#allocation8 + $0xb0] sm:$0xff]  }
 0x19c   :  { %2925 = vmatprep.subr.bf16.mxu1 %v5252_v35  ;;  %v5309_v35 = vld [vmem:[#allocation8 + $0x68] sm:$0xff]  }
 0x19e   :  { %2885 = vmatpush1.bf16.msra.mxu0 %v5247_v36  ;;  %v5310_v36 = vld [vmem:[#allocation8 + $0xe8] sm:$0xff]  }
 0x19f   :  { %2926 = vmatpush1.bf16.msra.mxu1 %v5250_v37  ;;  %2886 = vmatprep.subr.bf16.mxu0 %v5255_v38 }
 0x1a0   :  { %2927 = vmatprep.subr.bf16.mxu1 %v5258_v39  ;;  %v5311_v39 = vld [vmem:[#allocation8 + $0x28] sm:$0xff]  }
 0x1a2   :  { %2887 = vmatpush2.bf16.msra.mxu0 %v5253_v40 }
 0x1a3   :  { %2928 = vmatpush2.bf16.msra.mxu1 %v5256_v41  ;;  %2888 = vmatprep.subr.bf16.mxu0 %v5261_v43  ;;  %v5313_v41 = vld [vmem:[#allocation8 + $0x60] sm:$0xff]  }
 0x1a4   :  { %2929 = vmatprep.subr.bf16.mxu1 %v5264_v44  ;;  %v5314_v43 = vld [vmem:[#allocation8 + $0xe0] sm:$0xff]  }
 0x1a5   :  { %v5315_v44 = vld [vmem:[#allocation8 + $0x20] sm:$0xff]  }
 0x1a6   :  { %2889 = vmatpush2.bf16.msra.mxu0 %v5259_v45  ;;  %v5316_v45 = vld [vmem:[#allocation8 + $0xa0] sm:$0xff]  }
 0x1a7   :  { %2930 = vmatpush2.bf16.msra.mxu1 %v5262_v46  ;;  %2890 = vmatprep.subr.bf16.mxu0 %v5267_v47  ;;  %v5317_v46 = vld [vmem:[#allocation8 + $0x58] sm:$0xff]  }
 0x1a8   :  { %2931 = vmatprep.subr.bf16.mxu1 %v5270_v50  ;;  %v5318_v47 = vld [vmem:[#allocation8 + $0xd8] sm:$0xff]   ;;  %v502_v50 = vsub.s32 5, %v5615_v17 }
 0x1aa   :  { %2891 = vmatpush2.bf16.msra.mxu0 %v5265_v51  ;;  %v5319_v51 = vld [vmem:[#allocation8 + $0x18] sm:$0xff]  }
 0x1ab   :  { %2932 = vmatpush2.bf16.msra.mxu1 %v5268_v53  ;;  %2892 = vmatprep.subr.bf16.mxu0 %v5273_v54  ;;  %v5320_v53 = vld [vmem:[#allocation8 + $0x98] sm:$0xff]   ;;  %v5321_v54 = vld [vmem:[#allocation8 + $0x50] sm:$0xff]  }
 0x1ac   :  { %2933 = vmatprep.subr.bf16.mxu1 %v5276_v55  ;;  %v5322_v55 = vld [vmem:[#allocation8 + $0xd0] sm:$0xff]  }
 0x1ae   :  { %2893 = vmatpush2.bf16.msra.mxu0 %v5271_v56  ;;  %v5663_v56 = vld [vmem:[#allocation7] sm:$0xff] }
 0x1af   :  { %2934 = vmatpush2.bf16.msra.mxu1 %v5274_v57  ;;  %2894 = vmatprep.subr.bf16.mxu0 %v5279_v58  ;;  %v503_v57 = vrot.slane %v5663_v56, %v502_v50  ;;  %v5323_v58 = vld [vmem:[#allocation8 + $0x10] sm:$0xff]   ;;  %v5355_v50 = vld [vmem:[#allocation8 + $0x140] sm:$0xff]  }
 0x1b0   :  { %2935 = vmatprep.subr.bf16.mxu1 %v5282_v59  ;;  %v5324_v59 = vld [vmem:[#allocation8 + $0x90] sm:$0xff]  }
 0x1b2   :  { %2895 = vmatpush2.bf16.msra.mxu0 %v5277_v61  ;;  %v5325_v61 = vld [vmem:[#allocation8 + $0x48] sm:$0xff]  }
 0x1b3   :  { %2936 = vmatpush2.bf16.msra.mxu1 %v5280_v62  ;;  %2896 = vmatprep.subr.bf16.mxu0 %v5285_v63  ;;  %v5326_v62 = vld [vmem:[#allocation8 + $0xc8] sm:$0xff]  }
 0x1b4   :  { %2937 = vmatprep.subr.bf16.mxu1 %v5288_v0  ;;  %v5327_v0 = vld [vmem:[#allocation8 + $0x8] sm:$0xff]  }
 0x1b6   :  { %2897 = vmatpush2.bf16.msra.mxu0 %v5283_v2  ;;  %v5329_v2 = vld [vmem:[#allocation8 + $0x40] sm:$0xff]  }
 0x1b7   :  { %2938 = vmatpush2.bf16.msra.mxu1 %v5286_v6  ;;  %2898 = vmatprep.subr.bf16.mxu0 %v5291_v7  ;;  %v5330_v6 = vld [vmem:[#allocation8 + $0xc0] sm:$0xff]  }
 0x1b8   :  { %2939 = vmatprep.subr.bf16.mxu1 %v5294_v11  ;;  %v5331_v11 = vld [vmem:[#allocation8] sm:$0xff]  }
 0x1ba   :  { %2899 = vmatpush2.bf16.msra.mxu0 %v5289_v14  ;;  %v5332_v14 = vld [vmem:[#allocation8 + $0x80] sm:$0xff]  }
 0x1bb   :  { %2940 = vmatpush2.bf16.msra.mxu1 %v5292_v15  ;;  %2900 = vmatprep.subr.bf16.mxu0 %v5297_v16  ;;  %v5333_v15 = vld [vmem:[#allocation8 + $0x178] sm:$0xff]   ;;  %v2954_v16 = vmax.f32 %v5645_v5, 0.0  ;;  %v5337_v5 = vld [vmem:[#allocation8 + $0x168] sm:$0xff]  }
 0x1bc   :  { %2941 = vmatprep.subr.bf16.mxu1 %v5300_v18  ;;  %v5340_v18 = vld [vmem:[#allocation8 + $0x1f8] sm:$0xff]  }
 0x1be   :  { %2901 = vmatpush2.bf16.msra.mxu0 %v5295_v19  ;;  %v5334_v19 = vld [vmem:[#allocation8 + $0x138] sm:$0xff]  }
 0x1bf   :  { %2942 = vmatpush2.bf16.msra.mxu1 %v5298_v20  ;;  %4570 = vmatprep.subr.bf16.mxu0 %v5301_v21  ;;  %v2964_v20 = vpack.c.bf16 %v2952_v13, %v2952_v13  ;;  %v5335_v21 = vld [vmem:[#allocation8 + $0x170] sm:$0xff]  }
 0x1c0   :  { %4592 = vmatprep.subr.bf16.mxu1 %v5302_v24  ;;  %v2966_v24 = vpack.c.bf16 %v2954_v16, %v2954_v16 }
 0x1c1   :  { %v5656_v30 = vpop.f32.mrf.mxu0  ;;  %2903 = vmatmul.mubr.bf16.vlgmr.msra.gmra.mxu0 %v5598_v8 }
 0x1c2   :  { %v5658_v31 = vpop.f32.mrf.mxu1  ;;  %2944 = vmatmul.mubr.bf16.vlgmr.msra.gmra.mxu1 %v5600_v9  ;;  %4571 = vmatpush3.bf16.msra.mxu0 %v5303_v52  ;;  %v5312_v9 = vld [vmem:[#allocation8 + $0xa8] sm:$0xff]   ;;  %v5336_v52 = vld [vmem:[#allocation8 + $0x130] sm:$0xff]  }
 0x1c3   :  { %3783 = vmatprep.mubr.bf16.mxu0 %v2965_v27  ;;  %4593 = vmatpush3.bf16.msra.mxu1 %v5304_v25  ;;  %v2660_v32 = vpop.f32.mrf.mxu0  ;;  %v5346_v25 = vld [vmem:[#allocation8 + $0x1b0] sm:$0xff]   ;;  %v5348_v27 = vld [vmem:[#allocation8 + $0x1e8] sm:$0xff]  }
 0x1c4   :  { %3823 = vmatprep.mubr.bf16.mxu1 %v2967_v29  ;;  %v2701_v33 = vpop.f32.mrf.mxu1  ;;  %4572 = vmatprep.subr.bf16.mxu0 %v5305_v28  ;;  %v2661_v63 = vadd.f32 %v2660_v32, %v503_v57  ;;  %v5338_v28 = vld [vmem:[#allocation8 + $0x128] sm:$0xff]   ;;  %v5341_v32 = vld [vmem:[#allocation8 + $0x120] sm:$0xff]   ;;  %v5365_v57 = vld [vmem:[#allocation8 + $0x278] sm:$0xff]  }
 0x1c5   :  { %4594 = vmatprep.subr.bf16.mxu1 %v5306_v4  ;;  %v2662_v37 = vpop.f32.mrf.mxu0  ;;  %v5339_v4 = vld [vmem:[#allocation8 + $0x160] sm:$0xff]   ;;  %v5350_v29 = vld [vmem:[#allocation8 + $0x1a8] sm:$0xff]  }
 0x1c6   :  { %v2703_v38 = vpop.f32.mrf.mxu1  ;;  %4573 = vmatpush3.bf16.msra.mxu0 %v5307_v48  ;;  %v2702_v7 = vadd.f32 %v2701_v33, %v2661_v63  ;;  %v5352_v48 = vld [vmem:[#allocation8 + $0x1e0] sm:$0xff]   ;;  %v498_v33 = vsub.s32 4, %v5615_v17  ;;  %v5345_v37 = vld [vmem:[#allocation8 + $0x118] sm:$0xff]  }
 0x1c7   :  { %4595 = vmatpush3.bf16.msra.mxu1 %v5308_v34  ;;  %v2663_v8 = vpop.f32.mrf.mxu0  ;;  %4574 = vmatprep.subr.bf16.mxu0 %v5309_v35  ;;  %v5343_v34 = vld [vmem:[#allocation8 + $0x158] sm:$0xff]   ;;  %v5354_v35 = vld [vmem:[#allocation8 + $0x1a0] sm:$0xff]  }
 0x1c8   :  { %v2704_v40 = vpop.f32.mrf.mxu1  ;;  %4596 = vmatprep.subr.bf16.mxu1 %v5310_v36  ;;  %v2957_v22 = vmax.f32 %v2702_v7, 0.0  ;;  %v5356_v36 = vld [vmem:[#allocation8 + $0x1d8] sm:$0xff]   ;;  %v499_v38 = vrot.slane %v5663_v56, %v498_v33  ;;  %v5385_v33 = vld [vmem:[#allocation8 + $0x2e8] sm:$0xff]  }
 0x1c9   :  { %v5358_v8 = vld [vmem:[#allocation8 + $0x198] sm:$0xff]   ;;  %v5359_v40 = vld [vmem:[#allocation8 + $0x1d0] sm:$0xff]  }
 0x1ca   :  { %4575 = vmatpush3.bf16.msra.mxu0 %v5311_v39  ;;  %v2969_v49 = vpack.c.bf16 %v2957_v22, %v2957_v22  ;;  %v5347_v39 = vld [vmem:[#allocation8 + $0x150] sm:$0xff]  }
 0x1cb   :  { %4597 = vmatpush3.bf16.msra.mxu1 %v5312_v9  ;;  %4576 = vmatprep.subr.bf16.mxu0 %v5313_v41  ;;  %v5349_v9 = vld [vmem:[#allocation8 + $0x110] sm:$0xff]   ;;  %v2659_v41 = vadd.f32 %v5656_v30, %v499_v38  ;;  %v506_v30 = vsub.s32 6, %v5615_v17  ;;  %v5378_v38 = vld [vmem:[#allocation8 + $0x208] sm:$0xff]  }
 0x1cc   :  { %4598 = vmatprep.subr.bf16.mxu1 %v5314_v43  ;;  %v5351_v43 = vld [vmem:[#allocation8 + $0x148] sm:$0xff]  }
 0x1ce   :  { %4577 = vmatpush3.bf16.msra.mxu0 %v5315_v44  ;;  %v5360_v44 = vld [vmem:[#allocation8 + $0x190] sm:$0xff]  }
 0x1cf   :  { %4599 = vmatpush3.bf16.msra.mxu1 %v5316_v45  ;;  %4578 = vmatprep.subr.bf16.mxu0 %v5317_v46  ;;  %v5361_v45 = vld [vmem:[#allocation8 + $0x1c8] sm:$0xff]  }
 0x1d0   :  { %4600 = vmatprep.subr.bf16.mxu1 %v5318_v47  ;;  %v5353_v46 = vld [vmem:[#allocation8 + $0x108] sm:$0xff]   ;;  %v2700_v47 = vadd.f32 %v5658_v31, %v2659_v41  ;;  %v507_v31 = vrot.slane %v5663_v56, %v506_v30  ;;  %v5390_v41 = vld [vmem:[#allocation8 + $0x298] sm:$0xff]  }
 0x1d2   :  { %4579 = vmatpush3.bf16.msra.mxu0 %v5319_v51  ;;  %v5362_v51 = vld [vmem:[#allocation8 + $0x188] sm:$0xff]  }
 0x1d3   :  { %4601 = vmatpush3.bf16.msra.mxu1 %v5320_v53  ;;  %4580 = vmatprep.subr.bf16.mxu0 %v5321_v54  ;;  %v5363_v53 = vld [vmem:[#allocation8 + $0x1c0] sm:$0xff]  }
 0x1d4   :  { %4602 = vmatprep.subr.bf16.mxu1 %v5322_v55  ;;  %v5357_v54 = vld [vmem:[#allocation8 + $0x100] sm:$0xff]   ;;  %v2956_v55 = vmax.f32 %v2700_v47, 0.0 }
 0x1d5   :  { %v5395_v47 = vld [vmem:[#allocation8 + $0x2c0] sm:$0xff]  }
 0x1d6   :  { %4581 = vmatpush3.bf16.msra.mxu0 %v5323_v58  ;;  %v510_v58 = vsub.s32 7, %v5615_v17  ;;  %v2968_v63 = vpack.c.bf16 %v2956_v55, %v2956_v55 }
 0x1d7   :  { %4603 = vmatpush3.bf16.msra.mxu1 %v5324_v59  ;;  %4582 = vmatprep.subr.bf16.mxu0 %v5325_v61  ;;  %v5364_v59 = vld [vmem:[#allocation8 + $0x180] sm:$0xff]   ;;  %v5381_v61 = vld [vmem:[#allocation8 + $0x2f8] sm:$0xff]  }
 0x1d8   :  { %4604 = vmatprep.subr.bf16.mxu1 %v5326_v62  ;;  %v5366_v62 = vld [vmem:[#allocation8 + $0x238] sm:$0xff]  }
 0x1da   :  { %4583 = vmatpush3.bf16.msra.mxu0 %v5327_v0  ;;  %v5367_v0 = vld [vmem:[#allocation8 + $0x270] sm:$0xff]  }
 0x1db   :  { %4605 = vmatpush3.bf16.msra.mxu1 %v5328_v1  ;;  %4584 = vmatprep.subr.bf16.mxu0 %v5329_v2  ;;  %v511_v1 = vrot.slane %v5663_v56, %v510_v58 }
 0x1dc   :  { %4606 = vmatprep.subr.bf16.mxu1 %v5330_v6 }
 0x1de   :  { %4585 = vmatpush3.bf16.msra.mxu0 %v5331_v11  ;;  %v5368_v11 = vld [vmem:[#allocation8 + $0x230] sm:$0xff]  }
 0x1df   :  { %4607 = vmatpush3.bf16.msra.mxu1 %v5332_v14  ;;  %4614 = vmatprep.subr.bf16.mxu0 %v5333_v15  ;;  %v5369_v15 = vld [vmem:[#allocation8 + $0x268] sm:$0xff]  }
 0x1e0   :  { %4636 = vmatprep.subr.bf16.mxu1 %v5340_v18 }
 0x1e1   :  { %3784 = vmatmul.mubr.bf16.vlgmr.msra.gmra.mxu0 %v2964_v20 }
 0x1e2   :  { %3824 = vmatmul.mubr.bf16.vlgmr.msra.gmra.mxu1 %v2966_v24  ;;  %4615 = vmatpush3.bf16.msra.mxu0 %v5334_v19 }
 0x1e3   :  { %3863 = vmatprep.mubr.bf16.mxu0 %v2969_v49  ;;  %4616 = vmatprep.subr.bf16.mxu0 %v5335_v21  ;;  %v5370_v21 = vld [vmem:[#allocation8 + $0x228] sm:$0xff]   ;;  %v5371_v49 = vld [vmem:[#allocation8 + $0x260] sm:$0xff]  }
 0x1e4   :  { %4637 = vmatpush3.bf16.msra.mxu1 %v5342_v3 }
 0x1e5   :  { %4638 = vmatprep.subr.bf16.mxu1 %v5344_v42 }
 0x1e6   :  { %4617 = vmatpush3.bf16.msra.mxu0 %v5336_v52 }
 0x1e7   :  { %4618 = vmatprep.subr.bf16.mxu0 %v5337_v5  ;;  %v5372_v5 = vld [vmem:[#allocation8 + $0x220] sm:$0xff]  }
 0x1e8   :  { %4639 = vmatpush3.bf16.msra.mxu1 %v5346_v25  ;;  %v5382_v25 = vld [vmem:[#allocation8 + $0x2b8] sm:$0xff]  }
 0x1e9   :  { %4640 = vmatprep.subr.bf16.mxu1 %v5348_v27 }
 0x1ea   :  { %4619 = vmatpush3.bf16.msra.mxu0 %v5338_v28  ;;  %v5373_v28 = vld [vmem:[#allocation8 + $0x258] sm:$0xff]  }
 0x1eb   :  { %4620 = vmatprep.subr.bf16.mxu0 %v5339_v4  ;;  %v5383_v4 = vld [vmem:[#allocation8 + $0x2f0] sm:$0xff]  }
 0x1ec   :  { %4641 = vmatpush3.bf16.msra.mxu1 %v5350_v29  ;;  %v5374_v29 = vld [vmem:[#allocation8 + $0x218] sm:$0xff]  }
 0x1ed   :  { %4642 = vmatprep.subr.bf16.mxu1 %v5352_v48  ;;  %v5384_v48 = vld [vmem:[#allocation8 + $0x2b0] sm:$0xff]  }
 0x1ee   :  { %4621 = vmatpush3.bf16.msra.mxu0 %v5341_v32  ;;  %v5375_v32 = vld [vmem:[#allocation8 + $0x250] sm:$0xff]  }
 0x1ef   :  { %4622 = vmatprep.subr.bf16.mxu0 %v5343_v34  ;;  %v5376_v34 = vld [vmem:[#allocation8 + $0x210] sm:$0xff]  }
 0x1f0   :  { %4643 = vmatpush3.bf16.msra.mxu1 %v5354_v35  ;;  %v5386_v35 = vld [vmem:[#allocation8 + $0x2a8] sm:$0xff]  }
 0x1f1   :  { %4644 = vmatprep.subr.bf16.mxu1 %v5356_v36  ;;  %v5377_v36 = vld [vmem:[#allocation8 + $0x248] sm:$0xff]  }
 0x1f2   :  { %4623 = vmatpush3.bf16.msra.mxu0 %v5345_v37  ;;  %v5387_v37 = vld [vmem:[#allocation8 + $0x2e0] sm:$0xff]  }
 0x1f3   :  { %4624 = vmatprep.subr.bf16.mxu0 %v5347_v39  ;;  %v5388_v39 = vld [vmem:[#allocation8 + $0x2a0] sm:$0xff]  }
 0x1f4   :  { %4645 = vmatpush3.bf16.msra.mxu1 %v5358_v8  ;;  %v5379_v8 = vld [vmem:[#allocation8 + $0x240] sm:$0xff]  }
 0x1f5   :  { %4646 = vmatprep.subr.bf16.mxu1 %v5359_v40  ;;  %v5389_v40 = vld [vmem:[#allocation8 + $0x2d8] sm:$0xff]  }
 0x1f6   :  { %4625 = vmatpush3.bf16.msra.mxu0 %v5349_v9  ;;  %v5380_v9 = vld [vmem:[#allocation8 + $0x200] sm:$0xff]  }
 0x1f7   :  { %4626 = vmatprep.subr.bf16.mxu0 %v5351_v43  ;;  %v5391_v43 = vld [vmem:[#allocation8 + $0x2d0] sm:$0xff]  }
 0x1f8   :  { %4647 = vmatpush3.bf16.msra.mxu1 %v5360_v44  ;;  %v5392_v44 = vld [vmem:[#allocation8 + $0x290] sm:$0xff]  }
 0x1f9   :  { %4648 = vmatprep.subr.bf16.mxu1 %v5361_v45  ;;  %v5393_v45 = vld [vmem:[#allocation8 + $0x2c8] sm:$0xff]  }
 0x1fa   :  { %4627 = vmatpush3.bf16.msra.mxu0 %v5353_v46  ;;  %v5394_v46 = vld [vmem:[#allocation8 + $0x288] sm:$0xff]  }
 0x1fb   :  { %4628 = vmatprep.subr.bf16.mxu0 %v5355_v50  ;;  %v5396_v50 = vld [vmem:[#allocation8 + $0x280] sm:$0xff]  }
 0x1fc   :  { %4649 = vmatpush3.bf16.msra.mxu1 %v5362_v51  ;;  %v477_v51 = vld [vmem:[#allocation7 + $0x8] sm:$0xf] }
 0x1fd   :  { %4650 = vmatprep.subr.bf16.mxu1 %v5363_v53  ;;  %v515_v53 = vrot.slane %v477_v51, %v482_v23  ;;  %v523_v23 = vrot.slane %v477_v51, %v490_v10 }
 0x1fe   :  { %4629 = vmatpush3.bf16.msra.mxu0 %v5357_v54  ;;  %v519_v54 = vrot.slane %v477_v51, %v486_v26  ;;  %v527_v26 = vrot.slane %v477_v51, %v494_v60  ;;  %v4468_v60 = vld [vmem:[#allocation10] ss:$0 sm:$0xff] }
 0x1ff   :  { %4658 = vmatprep.subr.bf16.mxu0 %v5365_v57 }
 0x200   :  { %4651 = vmatpush3.bf16.msra.mxu1 %v5364_v59 }
 0x201   :  { %v2740_v2 = vpop.f32.mrf.mxu0  ;;  %3864 = vmatmul.mubr.bf16.vlgmr.msra.gmra.mxu0 %v2968_v63  ;;  %4680 = vmatprep.subr.bf16.mxu1 %v5381_v61 }
 0x202   :  { %v2781_v6 = vpop.f32.mrf.mxu1  ;;  %v2741_v7 = vadd.f32 %v2740_v2, %v507_v31  ;;  %4659 = vmatpush3.bf16.msra.mxu0 %v5366_v62 }
 0x203   :  { %v2742_v13 = vpop.f32.mrf.mxu0  ;;  %4660 = vmatprep.subr.bf16.mxu0 %v5367_v0 }
 0x204   :  { %v2783_v14 = vpop.f32.mrf.mxu1  ;;  %v2782_v16 = vadd.f32 %v2781_v6, %v2741_v7  ;;  %v2743_v18 = vadd.f32 %v2742_v13, %v511_v1 }
 0x205   :  { %v2744_v22 = vpop.f32.mrf.mxu0 }
 0x206   :  { %v2785_v19 = vpop.f32.mrf.mxu1  ;;  %v2784_v20 = vadd.f32 %v2783_v14, %v2743_v18  ;;  %4661 = vmatpush3.bf16.msra.mxu0 %v5368_v11  ;;  %v2958_v56 = vmax.f32 %v2782_v16, 0.0 }
 0x207   :  { %v2745_v24 = vpop.f32.mrf.mxu0  ;;  %4662 = vmatprep.subr.bf16.mxu0 %v5369_v15 }
 0x208   :  { %v2786_v3 = vpop.f32.mrf.mxu1  ;;  %v2959_v42 = vmax.f32 %v2784_v20, 0.0  ;;  %v2970_v27 = vpack.c.bf16 %v2958_v56, %v2958_v56 }
 0x20a   :  { %v2971_v52 = vpack.c.bf16 %v2959_v42, %v2959_v42  ;;  %4663 = vmatpush3.bf16.msra.mxu0 %v5370_v21 }
 0x20b   :  { %4664 = vmatprep.subr.bf16.mxu0 %v5371_v49 }
 0x20c   :  { %3903 = vmatprep.mubr.bf16.mxu1 %v2971_v52 }
 0x20d   :  { %3904 = vmatmul.mubr.bf16.vlgmr.msra.gmra.mxu1 %v2970_v27 }
 0x20e   :  { %4665 = vmatpush3.bf16.msra.mxu0 %v5372_v5  ;;  %4681 = vmatpush3.bf16.msra.mxu1 %v5382_v25 }
 0x20f   :  { %4666 = vmatprep.subr.bf16.mxu0 %v5373_v28  ;;  %4682 = vmatprep.subr.bf16.mxu1 %v5383_v4 }
 0x212   :  { %4667 = vmatpush3.bf16.msra.mxu0 %v5374_v29  ;;  %4683 = vmatpush3.bf16.msra.mxu1 %v5384_v48 }
 0x213   :  { %4668 = vmatprep.subr.bf16.mxu0 %v5375_v32  ;;  %4684 = vmatprep.subr.bf16.mxu1 %v5385_v33 }
 0x216   :  { %4669 = vmatpush3.bf16.msra.mxu0 %v5376_v34  ;;  %4685 = vmatpush3.bf16.msra.mxu1 %v5386_v35 }
 0x217   :  { %4670 = vmatprep.subr.bf16.mxu0 %v5377_v36  ;;  %4686 = vmatprep.subr.bf16.mxu1 %v5387_v37 }
 0x21a   :  { %4671 = vmatpush3.bf16.msra.mxu0 %v5378_v38  ;;  %4687 = vmatpush3.bf16.msra.mxu1 %v5388_v39 }
 0x21b   :  { %4672 = vmatprep.subr.bf16.mxu0 %v5379_v8  ;;  %4688 = vmatprep.subr.bf16.mxu1 %v5389_v40 }
 0x21e   :  { %4673 = vmatpush3.bf16.msra.mxu0 %v5380_v9  ;;  %4689 = vmatpush3.bf16.msra.mxu1 %v5390_v41 }
 0x21f   :  { %4690 = vmatprep.subr.bf16.mxu1 %v5391_v43 }
 0x222   :  { %4691 = vmatpush3.bf16.msra.mxu1 %v5392_v44 }
 0x223   :  { %4692 = vmatprep.subr.bf16.mxu1 %v5393_v45 }
 0x226   :  { %4693 = vmatpush3.bf16.msra.mxu1 %v5394_v46 }
 0x227   :  { %4694 = vmatprep.subr.bf16.mxu1 %v5395_v47 }
 0x22a   :  { %4695 = vmatpush3.bf16.msra.mxu1 %v5396_v50 }
 0x241   :  { %v2822_v30 = vpop.f32.mrf.mxu0 }
 0x242   :  { %v2863_v55 = vpop.f32.mrf.mxu1  ;;  %v2823_v57 = vadd.f32 %v2822_v30, %v515_v53 }
 0x243   :  { %v2824_v58 = vpop.f32.mrf.mxu0 }
 0x244   :  { %v2865_v59 = vpop.f32.mrf.mxu1  ;;  %v2864_v61 = vadd.f32 %v2863_v55, %v2823_v57  ;;  %v2825_v31 = vadd.f32 %v2824_v58, %v519_v54 }
 0x245   :  { %v2826_v62 = vpop.f32.mrf.mxu0 }
 0x246   :  { %v2867_v63 = vpop.f32.mrf.mxu1  ;;  %v2866_v0 = vadd.f32 %v2865_v59, %v2825_v31  ;;  %v2960_v1 = vmax.f32 %v2864_v61, 0.0 }
 0x247   :  { %v2827_v2 = vpop.f32.mrf.mxu0 }
 0x248   :  { %v2868_v6 = vpop.f32.mrf.mxu1  ;;  %v2961_v7 = vmax.f32 %v2866_v0, 0.0  ;;  %v2972_v13 = vpack.c.bf16 %v2960_v1, %v2960_v1 }
 0x24a   :  { %v2973_v11 = vpack.c.bf16 %v2961_v7, %v2961_v7 }
 0x24c   :  { %3943 = vmatprep.mubr.bf16.mxu0 %v2973_v11 }
 0x24d   :  { %3944 = vmatmul.mubr.bf16.vlgmr.msra.gmra.mxu0 %v2972_v13  ;;  %v5540_v13 = vmov 18  }
 0x24e   :  { %4722 = vset.pattern.permute.xlu0 %v5540_v13 }
 0x281   :  { %v2904_v14 = vpop.f32.mrf.mxu0 }
 0x282   :  { %v2945_v15 = vpop.f32.mrf.mxu1  ;;  %v2905_v16 = vadd.f32 %v2904_v14, %v523_v23  ;;  %v5541_v23 = vmov 15  }
 0x283   :  { %v2906_v18 = vpop.f32.mrf.mxu0  ;;  %4719 = vset.pattern.permute.xlu1 %v5541_v23 }
 0x284   :  { %v2947_v22 = vpop.f32.mrf.mxu1  ;;  %v2946_v19 = vadd.f32 %v2945_v15, %v2905_v16  ;;  %v2907_v20 = vadd.f32 %v2906_v18, %v527_v26  ;;  %v5542_v16 = vmov 16   ;;  %v5543_v18 = vmov 19  }
 0x285   :  { %v2908_v21 = vpop.f32.mrf.mxu0 }
 0x286   :  { %v2949_v56 = vpop.f32.mrf.mxu1  ;;  %v2948_v24 = vadd.f32 %v2947_v22, %v2907_v20  ;;  %v2962_v3 = vmax.f32 %v2946_v19, 0.0  ;;  %v5544_v22 = vmov 17   ;;  %v4009_v19 = vand.u32 127, %v480_v12 }
 0x287   :  { %v2909_v49 = vpop.f32.mrf.mxu0  ;;  %v5545_v21 = vmov 0.0  }
 0x288   :  { %v2950_v42 = vpop.f32.mrf.mxu1  ;;  %v2963_v52 = vmax.f32 %v2948_v24, 0.0  ;;  %v2974_v25 = vpack.c.bf16 %v2962_v3, %v2962_v3  ;;  %vm4021_vm2 = vcmp.ge.s32.totalorder %v4009_v19, 4  ;;  %vm4022_vm3 = vcmp.lt.s32.totalorder %v4009_v19, 7 }
 0x289   :  { %vm4023_vm4 = vmand %vm4021_vm2, %vm4022_vm3  ;;  %vm4032_vm5 = vcmp.ge.s32.totalorder %v4009_v19, 7  ;;  %vm4033_vm6 = vcmp.lt.s32.totalorder %v4009_v19, 10  ;;  %vm4011_vm7 = vcmp.lt.s32.totalorder %v4009_v19, 4  ;;  %vm4043_vm8 = vcmp.ge.s32.totalorder %v4009_v19, 10 }
 0x28a   :  { %v2975_v5 = vpack.c.bf16 %v2963_v52, %v2963_v52  ;;  %vm4044_vm9 = vcmp.lt.s32.totalorder %v4009_v19, 12  ;;  %v4566_v56 = vsel %vm4023_vm4, 1.0, %v5545_v21  ;;  %vm4034_vm10 = vmand %vm4032_vm5, %vm4033_vm6  ;;  %v4565_v3 = vsel %vm4011_vm7, 1.0, %v5545_v21 }
 0x28b   :  { %vm4045_vm11 = vmand %vm4043_vm8, %vm4044_vm9  ;;  %vm4054_vm12 = vcmp.ge.s32.totalorder %v4009_v19, 12  ;;  %vm4055_vm13 = vcmp.lt.s32.totalorder %v4009_v19, 15  ;;  %v4567_v42 = vsel %vm4034_vm10, 1.0, %v5545_v21 }
 0x28c   :  { %3983 = vmatprep.mubr.bf16.mxu1 %v2975_v5  ;;  %v4568_v52 = vsel %vm4045_vm11, 1.0, %v5545_v21  ;;  %vm4056_vm14 = vmand %vm4054_vm12, %vm4055_vm13 }
 0x28d   :  { %3984 = vmatmul.mubr.bf16.vlgmr.msra.gmra.mxu1 %v2974_v25 }
 0x2a1   :  { %v4586_v17 = vpop.f32.mrf.mxu0 }
 0x2a2   :  { %v4608_v10 = vpop.f32.mrf.mxu1 }
 0x2a3   :  { %v4587_v27 = vpop.f32.mrf.mxu0 }
 0x2a4   :  { %v4588_v28 = vadd.f32 %v4587_v27, %v4586_v17  ;;  %v4609_v4 = vpop.f32.mrf.mxu1 }
 0x2a5   :  { %v4610_v29 = vadd.f32 %v4609_v4, %v4608_v10  ;;  %v4589_v48 = vpop.f32.mrf.mxu0 }
 0x2a6   :  { %v3786_v32 = vadd.f32 %v4588_v28, %v4468_v60  ;;  %v4611_v33 = vpop.f32.mrf.mxu1  ;;  %v4569_v28 = vsel %vm4056_vm14, 1.0, %v5545_v21 }
 0x2a7   :  { %v4590_v34 = vpop.f32.mrf.mxu0 }
 0x2a8   :  { %v3826_v35 = vadd.f32 %v4610_v29, %v3786_v32  ;;  %v4612_v36 = vpop.f32.mrf.mxu1 }
 0x2c1   :  { %v4630_v37 = vpop.f32.mrf.mxu0 }
 0x2c3   :  { %v4631_v38 = vpop.f32.mrf.mxu0 }
 0x2c4   :  { %v4632_v39 = vadd.f32 %v4631_v38, %v4630_v37 }
 0x2c5   :  { %v4633_v8 = vpop.f32.mrf.mxu0 }
 0x2c6   :  { %v3866_v40 = vadd.f32 %v4632_v39, %v3826_v35 }
 0x2c7   :  { %v4634_v9 = vpop.f32.mrf.mxu0 }
 0x2cd   :  { %v4652_v41 = vpop.f32.mrf.mxu1 }
 0x2cf   :  { %v4653_v43 = vpop.f32.mrf.mxu1 }
 0x2d0   :  { %v4654_v44 = vadd.f32 %v4653_v43, %v4652_v41 }
 0x2d1   :  { %v4655_v45 = vpop.f32.mrf.mxu1 }
 0x2d2   :  { %v3906_v46 = vadd.f32 %v4654_v44, %v3866_v40 }
 0x2d3   :  { %v4656_v47 = vpop.f32.mrf.mxu1 }
 0x30d   :  { %v4674_v50 = vpop.f32.mrf.mxu0 }
 0x30f   :  { %v4675_v51 = vpop.f32.mrf.mxu0 }
 0x310   :  { %v4676_v53 = vadd.f32 %v4675_v51, %v4674_v50 }
 0x311   :  { %v4677_v54 = vpop.f32.mrf.mxu0 }
 0x312   :  { %v3946_v30 = vadd.f32 %v4676_v53, %v3906_v46 }
 0x313   :  { %v4678_v55 = vpop.f32.mrf.mxu0 }
 0x34d   :  { %v4696_v57 = vpop.f32.mrf.mxu1 }
 0x34f   :  { %v4697_v58 = vpop.f32.mrf.mxu1 }
 0x350   :  { %v4698_v59 = vadd.f32 %v4697_v58, %v4696_v57 }
 0x351   :  { %v4699_v61 = vpop.f32.mrf.mxu1 }
 0x352   :  { %v5684_v31 = vadd.f32 %v4698_v59, %v3946_v30 }
 0x353   :  { %v4700_v62 = vpop.f32.mrf.mxu1 }
 0x354   :  { %v3992_v63 = vsel %vm3991_vm0, %v5684_v31, -inf }
 0x355   :  { %3993 = vmax.xlane.f32.xlu0 %v3992_v63 }
 0x3de   :  { %v3994_v0 = vpop.xlane.xlu0 %3993 }
 0x3df   :  { %v3995_v1 = vsub.f32 %v5684_v31, %v3994_v0 }
 0x3e1   :  { %v3996_v2 = vmul.f32 1.442695, %v3995_v1 }
 0x3e3   :  { %5397 = vpow2.f32 %v3996_v2 }
 0x3f0   :  { %v5398_v6 = vpop.eup %5397 }
 0x3f1   :  { %3999 = vrot.lane.b32.xlu0 %v5398_v6, %s5539_s2 }
 0x463   :  { %v4000_v7 = vpop.permute.xlu0 %3999 }
 0x464   :  { %v4003_v11 = vsel %vm4002_vm1, %v4000_v7, 0.0 }
 0x465   :  { %4004 = vadd.xlane.f32.xlu1 %v4003_v11 }
 0x4ee   :  { %v4005_v26 = vpop.xlane.xlu1 %4004 }
 0x4ef   :  { %5399 = vrcp.f32 %v4005_v26 }
 0x4fc   :  { %v5400_v14 = vpop.eup %5399 }
 0x4fd   :  { %v4007_v15 = vmul.f32 %v5400_v14, %v5398_v6 }
 0x4ff   :  { %4049 = vperm.xlu0 %4722, %v4007_v15   ;;  %4017 = vperm.xlu1 %4719, %v4007_v15  }
 0x503   :  { %4720 = vset.pattern.permute.xlu1 %v5542_v16  ;;  %4724 = vset.pattern.permute.xlu0 %v5543_v18 }
 0x504   :  { %4027 = vperm.xlu1 %4720, %v4007_v15  }
 0x508   :  { %4721 = vset.pattern.permute.xlu1 %v5544_v22 }
 0x509   :  { %4038 = vperm.xlu1 %4721, %v4007_v15  }
 0x50d   :  { %4723 = vset.pattern.permute.xlu1 %v5543_v18 }
 0x50e   :  { %4060 = vperm.xlu1 %4723, %v4007_v15  }
 0x57a   :  { %v4018_v20 = vpop.permute.xlu1 %4017  ;;  %v4050_v5 = vpop.permute.xlu0 %4049 }
 0x57b   :  { %v4020_v12 = vmul.f32 %v4565_v3, %v4018_v20  ;;  %v4052_v60 = vmul.f32 %v4568_v52, %v4050_v5 }
 0x57f   :  { %v4028_v24 = vpop.permute.xlu1 %4027 }
 0x580   :  { %v4030_v49 = vmul.f32 %v4566_v56, %v4028_v24 }
 0x582   :  { %v4031_v17 = vadd.f32 %v4030_v49, %v4020_v12 }
 0x584   :  { %v4039_v25 = vpop.permute.xlu1 %4038 }
 0x585   :  { %v4041_v10 = vmul.f32 %v4567_v42, %v4039_v25 }
 0x587   :  { %v4042_v27 = vadd.f32 %v4041_v10, %v4031_v17 }
 0x589   :  { %v4053_v4 = vadd.f32 %v4052_v60, %v4042_v27  ;;  %v4061_v29 = vpop.permute.xlu1 %4060 }
 0x58a   :  { %v4063_v48 = vmul.f32 %v4569_v28, %v4061_v29 }
 0x58c   :  { %v4064_v32 = vadd.f32 %v4063_v48, %v4053_v4 }
 0x58e   :  { %v4065_v33 = vmul.f32 %v4064_v32, %v5684_v31 }
 0x590   :  { %4066 = vst [vmem:[#allocation11] sm:$0xff] %v4065_v33 }
 0x591   :  { %5513 = shalt.err (!%p5510_p1)
}
 0x592   :  { %4076 = dma.vmem_to_hbm [thread:$0]  %s4074_s20, 128, %s5698_s5, [#allocation4]  }
 0x593   :  { %5528 = dma.done.wait [#allocation4], 128  }
 0x594   :  { %5529 = vsyncadd [#allocation4], 4294967168 }
 0x595   :  { %4080 = vsyncpa [#allocation3], 1 }
 0x596   :  { %4081 = vsyncpa [#allocation6], 1 }
 0x597   :  { %4082 = vsyncpa [#allocation9], 1 }
 0x598   :  { %4083 = vsyncpa [#allocation4], 1 }

</bundles_post_ra>
